<compile_context>
chip_gen: v7x
topology: tpu7x:2x2x1
jax: 0.10.0
libtpu: 0.0.40
codegen_flags: <defaults>
</compile_context>

<pallas_src>
import functools
import math

import jax
import jax.numpy as jnp
from jax.experimental import pallas as pl

# ----------------------------- tiny BERT config -----------------------------
VOCAB = 64
MAX_POS = 16
HIDDEN = 32
HEADS = 4
HEAD_DIM = HIDDEN // HEADS
INTERMEDIATE = 64
LAYERS = 2
NUM_LABELS = 5
LN_EPS = 1e-12
ATTN_SCALE = 1.0 / math.sqrt(HEAD_DIM)
SQRT_HALF = 1.0 / math.sqrt(2.0)


# ------------------------------ in-kernel math helpers ------------------------------
def _ln(x, g, b):
    # PyTorch LayerNorm: biased variance, eps inside rsqrt.
    mean = jnp.mean(x, axis=-1, keepdims=True)
    var = jnp.mean((x - mean) ** 2, axis=-1, keepdims=True)
    return (x - mean) * jax.lax.rsqrt(var + LN_EPS) * g + b


def _erf(x):
    # Abramowitz & Stegun 7.1.26 — max abs error ~1.5e-7 (≈ f32 eps).  Uses only
    # abs/mul/add/exp/where, so it lowers in Mosaic without relying on an erf primitive.
    # TODO(synk): switch to jax.lax.erf once its Mosaic lowering is confirmed.
    ax = jnp.abs(x)
    t = 1.0 / (1.0 + 0.3275911 * ax)
    poly = t * (0.254829592 + t * (-0.284496736 + t * (1.421413741
             + t * (-1.453152027 + t * 1.061405429))))
    e = 1.0 - poly * jnp.exp(-ax * ax)
    return jnp.where(x < 0.0, -e, e)


def _gelu_exact(x):
    # BERT's exact (erf-based) GELU.
    return 0.5 * x * (1.0 + _erf(x * SQRT_HALF))


# ------------------------------ the single fused kernel ------------------------------
def _bert_fused_kernel(batch, seq,
                       x_ref, mask_ref,
                       emb_g_ref, emb_b_ref,
                       wqkv_ref, bqkv_ref, wo_ref, bo_ref, ln1g_ref, ln1b_ref,
                       wi_ref, bi_ref, wo2_ref, bo2_ref, ln2g_ref, ln2b_ref,
                       wp_ref, bp_ref, wc_ref, bc_ref,
                       out_ref):
    x = x_ref[...].astype(jnp.float32)                       # (B*S, H) embedding sum
    x = _ln(x, emb_g_ref[...], emb_b_ref[...])               # embedding LayerNorm
    mask = mask_ref[...]                                      # (B, 1, S) additive bias

    for l in range(LAYERS):                                   # static unroll (LAYERS=2)
        # ---- attention: one packed lane-dense QKV projection ----
        qkv = jnp.dot(x, wqkv_ref[l], preferred_element_type=jnp.float32) + bqkv_ref[l]
        q = qkv[:, 0:HIDDEN]
        k = qkv[:, HIDDEN:2 * HIDDEN]
        v = qkv[:, 2 * HIDDEN:3 * HIDDEN]
        wo = wo_ref[l]                                        # (H, H)
        attn = jnp.zeros_like(x)                              # out-proj accumulator
        for h in range(HEADS):                                # static unroll, 4 heads
            lo, hi = h * HEAD_DIM, (h + 1) * HEAD_DIM
            qh = q[:, lo:hi].reshape(batch, seq, HEAD_DIM)
            kh = k[:, lo:hi].reshape(batch, seq, HEAD_DIM)
            vh = v[:, lo:hi].reshape(batch, seq, HEAD_DIM)
            s = jnp.einsum('bqd,bkd->bqk', qh, kh,
                           preferred_element_type=jnp.float32) * ATTN_SCALE + mask
            s = s - jnp.max(s, axis=-1, keepdims=True)
            p = jnp.exp(s)
            p = p / jnp.sum(p, axis=-1, keepdims=True)        # exact softmax denom
            oh = jnp.einsum('bqk,bkd->bqd', p, vh,
                            preferred_element_type=jnp.float32)
            # concat(o_h) @ Wo  ==  sum_h o_h @ Wo[rows h]  -> no lane-dim concat needed
            attn = attn + jnp.dot(oh.reshape(batch * seq, HEAD_DIM), wo[lo:hi, :],
                                  preferred_element_type=jnp.float32)
        attn = attn + bo_ref[l]
        y = _ln(x + attn, ln1g_ref[l], ln1b_ref[l])           # residual + LN1

        # ---- FFN with exact-erf GELU fused in-kernel ----
        hpre = jnp.dot(y, wi_ref[l], preferred_element_type=jnp.float32) + bi_ref[l]
        hact = _gelu_exact(hpre)
        ffn = jnp.dot(hact, wo2_ref[l], preferred_element_type=jnp.float32) + bo2_ref[l]
        x = _ln(y + ffn, ln2g_ref[l], ln2b_ref[l])            # residual + LN2

    # ---- CLS extraction (one-hot selection matmul: avoids any relayout), pooler, head ----
    row_ids = jax.lax.broadcasted_iota(jnp.int32, (batch, batch * seq), 1)
    cls_ids = jax.lax.broadcasted_iota(jnp.int32, (batch, batch * seq), 0) * seq
    sel = (row_ids == cls_ids).astype(jnp.float32)            # (B, B*S) one-hot rows
    cls = jnp.dot(sel, x, preferred_element_type=jnp.float32)  # (B, H) = rows 0, S, ...
    pooled = jnp.tanh(jnp.dot(cls, wp_ref[...], preferred_element_type=jnp.float32)
                      + bp_ref[...])
    logits = jnp.dot(pooled, wc_ref[...], preferred_element_type=jnp.float32) + bc_ref[...]
    out_ref[...] = logits.astype(out_ref.dtype)


# --------------------------- parameter construction --------------------------
def init_params(key):
    def nrm(k, shape, std=0.02):
        return std * jax.random.normal(k, shape, dtype=jnp.float32)

    keys = iter(jax.random.split(key, 64))
    wqkv, bqkv, wo, bo, ln1g, ln1b = [], [], [], [], [], []
    wi, bi, wo2, bo2, ln2g, ln2b = [], [], [], [], [], []
    for _ in range(LAYERS):
        wq = nrm(next(keys), (HIDDEN, HIDDEN))
        wk = nrm(next(keys), (HIDDEN, HIDDEN))
        wv = nrm(next(keys), (HIDDEN, HIDDEN))
        wqkv.append(jnp.concatenate([wq, wk, wv], axis=1))     # packed (H, 3H), [in, out]
        bqkv.append(jnp.zeros((1, 3 * HIDDEN), jnp.float32))
        wo.append(nrm(next(keys), (HIDDEN, HIDDEN)))
        bo.append(jnp.zeros((1, HIDDEN), jnp.float32))
        ln1g.append(jnp.ones((1, HIDDEN), jnp.float32))
        ln1b.append(jnp.zeros((1, HIDDEN), jnp.float32))
        wi.append(nrm(next(keys), (HIDDEN, INTERMEDIATE)))
        bi.append(jnp.zeros((1, INTERMEDIATE), jnp.float32))
        wo2.append(nrm(next(keys), (INTERMEDIATE, HIDDEN)))
        bo2.append(jnp.zeros((1, HIDDEN), jnp.float32))
        ln2g.append(jnp.ones((1, HIDDEN), jnp.float32))
        ln2b.append(jnp.zeros((1, HIDDEN), jnp.float32))

    return {
        "word_emb": nrm(next(keys), (VOCAB, HIDDEN)),
        "pos_emb": nrm(next(keys), (MAX_POS, HIDDEN)),
        "type_emb": nrm(next(keys), (2, HIDDEN)),
        "emb_ln_g": jnp.ones((1, HIDDEN), jnp.float32),
        "emb_ln_b": jnp.zeros((1, HIDDEN), jnp.float32),
        # stacked per-layer weights, leading dim = layer index (kept VMEM-resident)
        "wqkv": jnp.stack(wqkv), "bqkv": jnp.stack(bqkv),
        "wo": jnp.stack(wo), "bo": jnp.stack(bo),
        "ln1_g": jnp.stack(ln1g), "ln1_b": jnp.stack(ln1b),
        "wi": jnp.stack(wi), "bi": jnp.stack(bi),
        "wo2": jnp.stack(wo2), "bo2": jnp.stack(bo2),
        "ln2_g": jnp.stack(ln2g), "ln2_b": jnp.stack(ln2b),
        "wp": nrm(next(keys), (HIDDEN, HIDDEN)),
        "bp": jnp.zeros((1, HIDDEN), jnp.float32),
        "wc": nrm(next(keys), (HIDDEN, NUM_LABELS)),
        "bc": jnp.zeros((1, NUM_LABELS), jnp.float32),
    }


# --------------------------------- forward -----------------------------------
@jax.jit
def multilabel_bert_forward(params, input_ids, attention_mask):
    B, S = input_ids.shape

    # Embedding gather + adds stay as trivial XLA glue; everything else is one kernel.
    we = jnp.take(params["word_emb"], input_ids, axis=0)            # (B, S, H)
    pe = params["pos_emb"][:S][None, :, :]                          # (1, S, H)
    te = params["type_emb"][0:1][None, :, :]                        # (1, 1, H)
    x = (we + pe + te).reshape(B * S, HIDDEN).astype(jnp.float32)

    # HF-style additive attention mask bias: (1 - mask) * -10000, shape (B, 1, S)
    mask_bias = ((1.0 - attention_mask.astype(jnp.float32)) * -10000.0).reshape(B, 1, S)

    kernel = functools.partial(_bert_fused_kernel, B, S)
    logits = pl.pallas_call(
        kernel,
        out_shape=jax.ShapeDtypeStruct((B, NUM_LABELS), jnp.float32),
        # no grid / no BlockSpecs: single invocation, every operand is a whole-array
        # VMEM-resident block (total padded footprint « 1 MiB).
    )(x, mask_bias,
      params["emb_ln_g"], params["emb_ln_b"],
      params["wqkv"], params["bqkv"], params["wo"], params["bo"],
      params["ln1_g"], params["ln1_b"],
      params["wi"], params["bi"], params["wo2"], params["bo2"],
      params["ln2_g"], params["ln2_b"],
      params["wp"], params["bp"], params["wc"], params["bc"])
    return logits


# ----------------------------------- main ------------------------------------
if __name__ == "__main__":
    key = jax.random.PRNGKey(0)
    pkey, ikey = jax.random.split(key)
    params = init_params(pkey)

    B, S = 2, 8
    input_ids = jax.random.randint(ikey, (B, S), 0, VOCAB, dtype=jnp.int32)
    attention_mask = jnp.array(
        [[1, 1, 1, 1, 1, 1, 1, 1],
         [1, 1, 1, 1, 1, 1, 0, 0]], dtype=jnp.int32)

    logits = multilabel_bert_forward(params, input_ids, attention_mask)
    logits = jax.block_until_ready(logits)
    assert logits.shape == (B, NUM_LABELS) and logits.dtype == jnp.float32
    print("KERNEL_OK")
</pallas_src>

<mosaic_0001>
module attributes {stable_mosaic.version = 11 : i64} {
  func.func @_bert_fused_kernel(%arg0: memref<16x32xf32, #tpu.memory_space<vmem>>, %arg1: memref<2x1x8xf32, #tpu.memory_space<vmem>>, %arg2: memref<1x32xf32, #tpu.memory_space<vmem>>, %arg3: memref<1x32xf32, #tpu.memory_space<vmem>>, %arg4: memref<2x32x96xf32, #tpu.memory_space<vmem>>, %arg5: memref<2x1x96xf32, #tpu.memory_space<vmem>>, %arg6: memref<2x32x32xf32, #tpu.memory_space<vmem>>, %arg7: memref<2x1x32xf32, #tpu.memory_space<vmem>>, %arg8: memref<2x1x32xf32, #tpu.memory_space<vmem>>, %arg9: memref<2x1x32xf32, #tpu.memory_space<vmem>>, %arg10: memref<2x32x64xf32, #tpu.memory_space<vmem>>, %arg11: memref<2x1x64xf32, #tpu.memory_space<vmem>>, %arg12: memref<2x64x32xf32, #tpu.memory_space<vmem>>, %arg13: memref<2x1x32xf32, #tpu.memory_space<vmem>>, %arg14: memref<2x1x32xf32, #tpu.memory_space<vmem>>, %arg15: memref<2x1x32xf32, #tpu.memory_space<vmem>>, %arg16: memref<32x32xf32, #tpu.memory_space<vmem>>, %arg17: memref<1x32xf32, #tpu.memory_space<vmem>>, %arg18: memref<32x5xf32, #tpu.memory_space<vmem>>, %arg19: memref<1x5xf32, #tpu.memory_space<vmem>>, %arg20: memref<2x5xf32, #tpu.memory_space<vmem>>) attributes {dimension_semantics = [], scalar_prefetch = 0 : i64, scratch_operands = 0 : i64, tpu.core_type = #tpu.core_type<tc>} {
    %c0 = arith.constant 0 : index
    %c0_0 = arith.constant 0 : index
    %0 = vector.load %arg0[%c0, %c0_0] : memref<16x32xf32, #tpu.memory_space<vmem>>, vector<16x32xf32>
    %c0_1 = arith.constant 0 : index
    %c0_2 = arith.constant 0 : index
    %1 = vector.load %arg2[%c0_1, %c0_2] : memref<1x32xf32, #tpu.memory_space<vmem>>, vector<1x32xf32>
    %c0_3 = arith.constant 0 : index
    %c0_4 = arith.constant 0 : index
    %2 = vector.load %arg3[%c0_3, %c0_4] : memref<1x32xf32, #tpu.memory_space<vmem>>, vector<1x32xf32>
    %cst = arith.constant dense<0.000000e+00> : vector<16xf32>
    %3 = vector.multi_reduction <add>, %0, %cst [1] : vector<16x32xf32> to vector<16xf32>
    %4 = vector.shape_cast %3 : vector<16xf32> to vector<16x1xf32>
    %cst_5 = arith.constant 3.200000e+01 : f32
    %5 = vector.broadcast %cst_5 : f32 to vector<16x1xf32>
    %6 = arith.divf %4, %5 : vector<16x1xf32>
    %7 = vector.broadcast %6 : vector<16x1xf32> to vector<16x32xf32>
    %8 = arith.subf %0, %7 : vector<16x32xf32>
    %9 = arith.mulf %8, %8 : vector<16x32xf32>
    %cst_6 = arith.constant dense<0.000000e+00> : vector<16xf32>
    %10 = vector.multi_reduction <add>, %9, %cst_6 [1] : vector<16x32xf32> to vector<16xf32>
    %11 = vector.shape_cast %10 : vector<16xf32> to vector<16x1xf32>
    %cst_7 = arith.constant 3.200000e+01 : f32
    %12 = vector.broadcast %cst_7 : f32 to vector<16x1xf32>
    %13 = arith.divf %11, %12 : vector<16x1xf32>
    %14 = vector.broadcast %6 : vector<16x1xf32> to vector<16x32xf32>
    %15 = arith.subf %0, %14 : vector<16x32xf32>
    %cst_8 = arith.constant 9.99999996E-13 : f32
    %16 = vector.broadcast %cst_8 : f32 to vector<16x1xf32>
    %17 = arith.addf %13, %16 : vector<16x1xf32>
    %18 = math.rsqrt %17 : vector<16x1xf32>
    %19 = vector.broadcast %18 : vector<16x1xf32> to vector<16x32xf32>
    %20 = arith.mulf %15, %19 : vector<16x32xf32>
    %21 = vector.broadcast %1 : vector<1x32xf32> to vector<16x32xf32>
    %22 = arith.mulf %20, %21 : vector<16x32xf32>
    %23 = vector.broadcast %2 : vector<1x32xf32> to vector<16x32xf32>
    %24 = arith.addf %22, %23 : vector<16x32xf32>
    %c0_9 = arith.constant 0 : index
    %c0_10 = arith.constant 0 : index
    %c0_11 = arith.constant 0 : index
    %25 = vector.load %arg1[%c0_9, %c0_10, %c0_11] : memref<2x1x8xf32, #tpu.memory_space<vmem>>, vector<2x1x8xf32>
    %c0_12 = arith.constant 0 : index
    %c0_13 = arith.constant 0 : index
    %c0_14 = arith.constant 0 : index
    %26 = vector.load %arg4[%c0_12, %c0_13, %c0_14] : memref<2x32x96xf32, #tpu.memory_space<vmem>>, vector<1x32x96xf32>
    %27 = vector.shape_cast %26 : vector<1x32x96xf32> to vector<32x96xf32>
    %cst_15 = arith.constant dense<0.000000e+00> : vector<16x96xf32>
    %28 = tpu.matmul %24, %27, %cst_15 {dimension_numbers = #tpu.dot_dimension_numbers<[1], [0], [0], [1], [0, 0, 1, 1], [], []>} : vector<16x32xf32>, vector<32x96xf32>, vector<16x96xf32> -> vector<16x96xf32>
    %c0_16 = arith.constant 0 : index
    %c0_17 = arith.constant 0 : index
    %c0_18 = arith.constant 0 : index
    %29 = vector.load %arg5[%c0_16, %c0_17, %c0_18] : memref<2x1x96xf32, #tpu.memory_space<vmem>>, vector<1x1x96xf32>
    %30 = vector.shape_cast %29 : vector<1x1x96xf32> to vector<1x96xf32>
    %31 = vector.broadcast %30 : vector<1x96xf32> to vector<16x96xf32>
    %32 = arith.addf %28, %31 : vector<16x96xf32>
    %33 = vector.extract_strided_slice %32 {offsets = [0, 0], sizes = [16, 32], strides = [1, 1]} : vector<16x96xf32> to vector<16x32xf32>
    %34 = vector.extract_strided_slice %32 {offsets = [0, 32], sizes = [16, 32], strides = [1, 1]} : vector<16x96xf32> to vector<16x32xf32>
    %35 = vector.extract_strided_slice %32 {offsets = [0, 64], sizes = [16, 32], strides = [1, 1]} : vector<16x96xf32> to vector<16x32xf32>
    %c0_19 = arith.constant 0 : index
    %c0_20 = arith.constant 0 : index
    %c0_21 = arith.constant 0 : index
    %36 = vector.load %arg6[%c0_19, %c0_20, %c0_21] : memref<2x32x32xf32, #tpu.memory_space<vmem>>, vector<1x32x32xf32>
    %37 = vector.shape_cast %36 : vector<1x32x32xf32> to vector<32x32xf32>
    %cst_22 = arith.constant 0.000000e+00 : f32
    %38 = vector.broadcast %cst_22 : f32 to vector<16x32xf32>
    %39 = vector.extract_strided_slice %33 {offsets = [0, 0], sizes = [16, 8], strides = [1, 1]} : vector<16x32xf32> to vector<16x8xf32>
    %40 = vector.shape_cast %39 : vector<16x8xf32> to vector<2x8x8xf32>
    %41 = vector.extract_strided_slice %34 {offsets = [0, 0], sizes = [16, 8], strides = [1, 1]} : vector<16x32xf32> to vector<16x8xf32>
    %42 = vector.shape_cast %41 : vector<16x8xf32> to vector<2x8x8xf32>
    %43 = vector.extract_strided_slice %35 {offsets = [0, 0], sizes = [16, 8], strides = [1, 1]} : vector<16x32xf32> to vector<16x8xf32>
    %44 = vector.shape_cast %43 : vector<16x8xf32> to vector<2x8x8xf32>
    "tpu.trace_start"() <{level = 10 : i32, message = "bqd,bkd->bqk"}> : () -> ()
    %cst_23 = arith.constant dense<0.000000e+00> : vector<2x8x8xf32>
    %45 = tpu.matmul %40, %42, %cst_23 {dimension_numbers = #tpu.dot_dimension_numbers<[2], [2], [1], [1], [0, 0, 0, 1, 1, 1], [0], [0]>} : vector<2x8x8xf32>, vector<2x8x8xf32>, vector<2x8x8xf32> -> vector<2x8x8xf32>
    "tpu.trace_stop"() : () -> ()
    %cst_24 = arith.constant 0.353553385 : f32
    %46 = vector.broadcast %cst_24 : f32 to vector<2x8x8xf32>
    %47 = arith.mulf %45, %46 : vector<2x8x8xf32>
    %48 = vector.broadcast %25 : vector<2x1x8xf32> to vector<2x8x8xf32>
    %49 = arith.addf %47, %48 : vector<2x8x8xf32>
    %cst_25 = arith.constant dense<0xFF800000> : vector<2x8xf32>
    %50 = vector.multi_reduction <maximumf>, %49, %cst_25 [2] : vector<2x8x8xf32> to vector<2x8xf32>
    %51 = vector.shape_cast %50 : vector<2x8xf32> to vector<2x8x1xf32>
    %52 = vector.broadcast %51 : vector<2x8x1xf32> to vector<2x8x8xf32>
    %53 = arith.subf %49, %52 : vector<2x8x8xf32>
    %54 = math.exp %53 : vector<2x8x8xf32>
    %cst_26 = arith.constant dense<0.000000e+00> : vector<2x8xf32>
    %55 = vector.multi_reduction <add>, %54, %cst_26 [2] : vector<2x8x8xf32> to vector<2x8xf32>
    %56 = vector.shape_cast %55 : vector<2x8xf32> to vector<2x8x1xf32>
    %57 = vector.broadcast %56 : vector<2x8x1xf32> to vector<2x8x8xf32>
    %58 = arith.divf %54, %57 : vector<2x8x8xf32>
    "tpu.trace_start"() <{level = 10 : i32, message = "bqk,bkd->bqd"}> : () -> ()
    %cst_27 = arith.constant dense<0.000000e+00> : vector<2x8x8xf32>
    %59 = tpu.matmul %58, %44, %cst_27 {dimension_numbers = #tpu.dot_dimension_numbers<[2], [1], [1], [2], [0, 0, 0, 1, 1, 2], [0], [0]>} : vector<2x8x8xf32>, vector<2x8x8xf32>, vector<2x8x8xf32> -> vector<2x8x8xf32>
    "tpu.trace_stop"() : () -> ()
    %60 = vector.shape_cast %59 : vector<2x8x8xf32> to vector<16x8xf32>
    %61 = vector.extract_strided_slice %37 {offsets = [0, 0], sizes = [8, 32], strides = [1, 1]} : vector<32x32xf32> to vector<8x32xf32>
    %cst_28 = arith.constant dense<0.000000e+00> : vector<16x32xf32>
    %62 = tpu.matmul %60, %61, %cst_28 {dimension_numbers = #tpu.dot_dimension_numbers<[1], [0], [0], [1], [0, 0, 1, 1], [], []>} : vector<16x8xf32>, vector<8x32xf32>, vector<16x32xf32> -> vector<16x32xf32>
    %63 = arith.addf %38, %62 : vector<16x32xf32>
    %64 = vector.extract_strided_slice %33 {offsets = [0, 8], sizes = [16, 8], strides = [1, 1]} : vector<16x32xf32> to vector<16x8xf32>
    %65 = vector.shape_cast %64 : vector<16x8xf32> to vector<2x8x8xf32>
    %66 = vector.extract_strided_slice %34 {offsets = [0, 8], sizes = [16, 8], strides = [1, 1]} : vector<16x32xf32> to vector<16x8xf32>
    %67 = vector.shape_cast %66 : vector<16x8xf32> to vector<2x8x8xf32>
    %68 = vector.extract_strided_slice %35 {offsets = [0, 8], sizes = [16, 8], strides = [1, 1]} : vector<16x32xf32> to vector<16x8xf32>
    %69 = vector.shape_cast %68 : vector<16x8xf32> to vector<2x8x8xf32>
    "tpu.trace_start"() <{level = 10 : i32, message = "bqd,bkd->bqk"}> : () -> ()
    %cst_29 = arith.constant dense<0.000000e+00> : vector<2x8x8xf32>
    %70 = tpu.matmul %65, %67, %cst_29 {dimension_numbers = #tpu.dot_dimension_numbers<[2], [2], [1], [1], [0, 0, 0, 1, 1, 1], [0], [0]>} : vector<2x8x8xf32>, vector<2x8x8xf32>, vector<2x8x8xf32> -> vector<2x8x8xf32>
    "tpu.trace_stop"() : () -> ()
    %cst_30 = arith.constant 0.353553385 : f32
    %71 = vector.broadcast %cst_30 : f32 to vector<2x8x8xf32>
    %72 = arith.mulf %70, %71 : vector<2x8x8xf32>
    %73 = vector.broadcast %25 : vector<2x1x8xf32> to vector<2x8x8xf32>
    %74 = arith.addf %72, %73 : vector<2x8x8xf32>
    %cst_31 = arith.constant dense<0xFF800000> : vector<2x8xf32>
    %75 = vector.multi_reduction <maximumf>, %74, %cst_31 [2] : vector<2x8x8xf32> to vector<2x8xf32>
    %76 = vector.shape_cast %75 : vector<2x8xf32> to vector<2x8x1xf32>
    %77 = vector.broadcast %76 : vector<2x8x1xf32> to vector<2x8x8xf32>
    %78 = arith.subf %74, %77 : vector<2x8x8xf32>
    %79 = math.exp %78 : vector<2x8x8xf32>
    %cst_32 = arith.constant dense<0.000000e+00> : vector<2x8xf32>
    %80 = vector.multi_reduction <add>, %79, %cst_32 [2] : vector<2x8x8xf32> to vector<2x8xf32>
    %81 = vector.shape_cast %80 : vector<2x8xf32> to vector<2x8x1xf32>
    %82 = vector.broadcast %81 : vector<2x8x1xf32> to vector<2x8x8xf32>
    %83 = arith.divf %79, %82 : vector<2x8x8xf32>
    "tpu.trace_start"() <{level = 10 : i32, message = "bqk,bkd->bqd"}> : () -> ()
    %cst_33 = arith.constant dense<0.000000e+00> : vector<2x8x8xf32>
    %84 = tpu.matmul %83, %69, %cst_33 {dimension_numbers = #tpu.dot_dimension_numbers<[2], [1], [1], [2], [0, 0, 0, 1, 1, 2], [0], [0]>} : vector<2x8x8xf32>, vector<2x8x8xf32>, vector<2x8x8xf32> -> vector<2x8x8xf32>
    "tpu.trace_stop"() : () -> ()
    %85 = vector.shape_cast %84 : vector<2x8x8xf32> to vector<16x8xf32>
    %86 = vector.extract_strided_slice %37 {offsets = [8, 0], sizes = [8, 32], strides = [1, 1]} : vector<32x32xf32> to vector<8x32xf32>
    %cst_34 = arith.constant dense<0.000000e+00> : vector<16x32xf32>
    %87 = tpu.matmul %85, %86, %cst_34 {dimension_numbers = #tpu.dot_dimension_numbers<[1], [0], [0], [1], [0, 0, 1, 1], [], []>} : vector<16x8xf32>, vector<8x32xf32>, vector<16x32xf32> -> vector<16x32xf32>
    %88 = arith.addf %63, %87 : vector<16x32xf32>
    %89 = vector.extract_strided_slice %33 {offsets = [0, 16], sizes = [16, 8], strides = [1, 1]} : vector<16x32xf32> to vector<16x8xf32>
    %90 = vector.shape_cast %89 : vector<16x8xf32> to vector<2x8x8xf32>
    %91 = vector.extract_strided_slice %34 {offsets = [0, 16], sizes = [16, 8], strides = [1, 1]} : vector<16x32xf32> to vector<16x8xf32>
    %92 = vector.shape_cast %91 : vector<16x8xf32> to vector<2x8x8xf32>
    %93 = vector.extract_strided_slice %35 {offsets = [0, 16], sizes = [16, 8], strides = [1, 1]} : vector<16x32xf32> to vector<16x8xf32>
    %94 = vector.shape_cast %93 : vector<16x8xf32> to vector<2x8x8xf32>
    "tpu.trace_start"() <{level = 10 : i32, message = "bqd,bkd->bqk"}> : () -> ()
    %cst_35 = arith.constant dense<0.000000e+00> : vector<2x8x8xf32>
    %95 = tpu.matmul %90, %92, %cst_35 {dimension_numbers = #tpu.dot_dimension_numbers<[2], [2], [1], [1], [0, 0, 0, 1, 1, 1], [0], [0]>} : vector<2x8x8xf32>, vector<2x8x8xf32>, vector<2x8x8xf32> -> vector<2x8x8xf32>
    "tpu.trace_stop"() : () -> ()
    %cst_36 = arith.constant 0.353553385 : f32
    %96 = vector.broadcast %cst_36 : f32 to vector<2x8x8xf32>
    %97 = arith.mulf %95, %96 : vector<2x8x8xf32>
    %98 = vector.broadcast %25 : vector<2x1x8xf32> to vector<2x8x8xf32>
    %99 = arith.addf %97, %98 : vector<2x8x8xf32>
    %cst_37 = arith.constant dense<0xFF800000> : vector<2x8xf32>
    %100 = vector.multi_reduction <maximumf>, %99, %cst_37 [2] : vector<2x8x8xf32> to vector<2x8xf32>
    %101 = vector.shape_cast %100 : vector<2x8xf32> to vector<2x8x1xf32>
    %102 = vector.broadcast %101 : vector<2x8x1xf32> to vector<2x8x8xf32>
    %103 = arith.subf %99, %102 : vector<2x8x8xf32>
    %104 = math.exp %103 : vector<2x8x8xf32>
    %cst_38 = arith.constant dense<0.000000e+00> : vector<2x8xf32>
    %105 = vector.multi_reduction <add>, %104, %cst_38 [2] : vector<2x8x8xf32> to vector<2x8xf32>
    %106 = vector.shape_cast %105 : vector<2x8xf32> to vector<2x8x1xf32>
    %107 = vector.broadcast %106 : vector<2x8x1xf32> to vector<2x8x8xf32>
    %108 = arith.divf %104, %107 : vector<2x8x8xf32>
    "tpu.trace_start"() <{level = 10 : i32, message = "bqk,bkd->bqd"}> : () -> ()
    %cst_39 = arith.constant dense<0.000000e+00> : vector<2x8x8xf32>
    %109 = tpu.matmul %108, %94, %cst_39 {dimension_numbers = #tpu.dot_dimension_numbers<[2], [1], [1], [2], [0, 0, 0, 1, 1, 2], [0], [0]>} : vector<2x8x8xf32>, vector<2x8x8xf32>, vector<2x8x8xf32> -> vector<2x8x8xf32>
    "tpu.trace_stop"() : () -> ()
    %110 = vector.shape_cast %109 : vector<2x8x8xf32> to vector<16x8xf32>
    %111 = vector.extract_strided_slice %37 {offsets = [16, 0], sizes = [8, 32], strides = [1, 1]} : vector<32x32xf32> to vector<8x32xf32>
    %cst_40 = arith.constant dense<0.000000e+00> : vector<16x32xf32>
    %112 = tpu.matmul %110, %111, %cst_40 {dimension_numbers = #tpu.dot_dimension_numbers<[1], [0], [0], [1], [0, 0, 1, 1], [], []>} : vector<16x8xf32>, vector<8x32xf32>, vector<16x32xf32> -> vector<16x32xf32>
    %113 = arith.addf %88, %112 : vector<16x32xf32>
    %114 = vector.extract_strided_slice %33 {offsets = [0, 24], sizes = [16, 8], strides = [1, 1]} : vector<16x32xf32> to vector<16x8xf32>
    %115 = vector.shape_cast %114 : vector<16x8xf32> to vector<2x8x8xf32>
    %116 = vector.extract_strided_slice %34 {offsets = [0, 24], sizes = [16, 8], strides = [1, 1]} : vector<16x32xf32> to vector<16x8xf32>
    %117 = vector.shape_cast %116 : vector<16x8xf32> to vector<2x8x8xf32>
    %118 = vector.extract_strided_slice %35 {offsets = [0, 24], sizes = [16, 8], strides = [1, 1]} : vector<16x32xf32> to vector<16x8xf32>
    %119 = vector.shape_cast %118 : vector<16x8xf32> to vector<2x8x8xf32>
    "tpu.trace_start"() <{level = 10 : i32, message = "bqd,bkd->bqk"}> : () -> ()
    %cst_41 = arith.constant dense<0.000000e+00> : vector<2x8x8xf32>
    %120 = tpu.matmul %115, %117, %cst_41 {dimension_numbers = #tpu.dot_dimension_numbers<[2], [2], [1], [1], [0, 0, 0, 1, 1, 1], [0], [0]>} : vector<2x8x8xf32>, vector<2x8x8xf32>, vector<2x8x8xf32> -> vector<2x8x8xf32>
    "tpu.trace_stop"() : () -> ()
    %cst_42 = arith.constant 0.353553385 : f32
    %121 = vector.broadcast %cst_42 : f32 to vector<2x8x8xf32>
    %122 = arith.mulf %120, %121 : vector<2x8x8xf32>
    %123 = vector.broadcast %25 : vector<2x1x8xf32> to vector<2x8x8xf32>
    %124 = arith.addf %122, %123 : vector<2x8x8xf32>
    %cst_43 = arith.constant dense<0xFF800000> : vector<2x8xf32>
    %125 = vector.multi_reduction <maximumf>, %124, %cst_43 [2] : vector<2x8x8xf32> to vector<2x8xf32>
    %126 = vector.shape_cast %125 : vector<2x8xf32> to vector<2x8x1xf32>
    %127 = vector.broadcast %126 : vector<2x8x1xf32> to vector<2x8x8xf32>
    %128 = arith.subf %124, %127 : vector<2x8x8xf32>
    %129 = math.exp %128 : vector<2x8x8xf32>
    %cst_44 = arith.constant dense<0.000000e+00> : vector<2x8xf32>
    %130 = vector.multi_reduction <add>, %129, %cst_44 [2] : vector<2x8x8xf32> to vector<2x8xf32>
    %131 = vector.shape_cast %130 : vector<2x8xf32> to vector<2x8x1xf32>
    %132 = vector.broadcast %131 : vector<2x8x1xf32> to vector<2x8x8xf32>
    %133 = arith.divf %129, %132 : vector<2x8x8xf32>
    "tpu.trace_start"() <{level = 10 : i32, message = "bqk,bkd->bqd"}> : () -> ()
    %cst_45 = arith.constant dense<0.000000e+00> : vector<2x8x8xf32>
    %134 = tpu.matmul %133, %119, %cst_45 {dimension_numbers = #tpu.dot_dimension_numbers<[2], [1], [1], [2], [0, 0, 0, 1, 1, 2], [0], [0]>} : vector<2x8x8xf32>, vector<2x8x8xf32>, vector<2x8x8xf32> -> vector<2x8x8xf32>
    "tpu.trace_stop"() : () -> ()
    %135 = vector.shape_cast %134 : vector<2x8x8xf32> to vector<16x8xf32>
    %136 = vector.extract_strided_slice %37 {offsets = [24, 0], sizes = [8, 32], strides = [1, 1]} : vector<32x32xf32> to vector<8x32xf32>
    %cst_46 = arith.constant dense<0.000000e+00> : vector<16x32xf32>
    %137 = tpu.matmul %135, %136, %cst_46 {dimension_numbers = #tpu.dot_dimension_numbers<[1], [0], [0], [1], [0, 0, 1, 1], [], []>} : vector<16x8xf32>, vector<8x32xf32>, vector<16x32xf32> -> vector<16x32xf32>
    %138 = arith.addf %113, %137 : vector<16x32xf32>
    %c0_47 = arith.constant 0 : index
    %c0_48 = arith.constant 0 : index
    %c0_49 = arith.constant 0 : index
    %139 = vector.load %arg7[%c0_47, %c0_48, %c0_49] : memref<2x1x32xf32, #tpu.memory_space<vmem>>, vector<1x1x32xf32>
    %140 = vector.shape_cast %139 : vector<1x1x32xf32> to vector<1x32xf32>
    %141 = vector.broadcast %140 : vector<1x32xf32> to vector<16x32xf32>
    %142 = arith.addf %138, %141 : vector<16x32xf32>
    %143 = arith.addf %24, %142 : vector<16x32xf32>
    %c0_50 = arith.constant 0 : index
    %c0_51 = arith.constant 0 : index
    %c0_52 = arith.constant 0 : index
    %144 = vector.load %arg8[%c0_50, %c0_51, %c0_52] : memref<2x1x32xf32, #tpu.memory_space<vmem>>, vector<1x1x32xf32>
    %145 = vector.shape_cast %144 : vector<1x1x32xf32> to vector<1x32xf32>
    %c0_53 = arith.constant 0 : index
    %c0_54 = arith.constant 0 : index
    %c0_55 = arith.constant 0 : index
    %146 = vector.load %arg9[%c0_53, %c0_54, %c0_55] : memref<2x1x32xf32, #tpu.memory_space<vmem>>, vector<1x1x32xf32>
    %147 = vector.shape_cast %146 : vector<1x1x32xf32> to vector<1x32xf32>
    %cst_56 = arith.constant dense<0.000000e+00> : vector<16xf32>
    %148 = vector.multi_reduction <add>, %143, %cst_56 [1] : vector<16x32xf32> to vector<16xf32>
    %149 = vector.shape_cast %148 : vector<16xf32> to vector<16x1xf32>
    %cst_57 = arith.constant 3.200000e+01 : f32
    %150 = vector.broadcast %cst_57 : f32 to vector<16x1xf32>
    %151 = arith.divf %149, %150 : vector<16x1xf32>
    %152 = vector.broadcast %151 : vector<16x1xf32> to vector<16x32xf32>
    %153 = arith.subf %143, %152 : vector<16x32xf32>
    %154 = arith.mulf %153, %153 : vector<16x32xf32>
    %cst_58 = arith.constant dense<0.000000e+00> : vector<16xf32>
    %155 = vector.multi_reduction <add>, %154, %cst_58 [1] : vector<16x32xf32> to vector<16xf32>
    %156 = vector.shape_cast %155 : vector<16xf32> to vector<16x1xf32>
    %cst_59 = arith.constant 3.200000e+01 : f32
    %157 = vector.broadcast %cst_59 : f32 to vector<16x1xf32>
    %158 = arith.divf %156, %157 : vector<16x1xf32>
    %159 = vector.broadcast %151 : vector<16x1xf32> to vector<16x32xf32>
    %160 = arith.subf %143, %159 : vector<16x32xf32>
    %cst_60 = arith.constant 9.99999996E-13 : f32
    %161 = vector.broadcast %cst_60 : f32 to vector<16x1xf32>
    %162 = arith.addf %158, %161 : vector<16x1xf32>
    %163 = math.rsqrt %162 : vector<16x1xf32>
    %164 = vector.broadcast %163 : vector<16x1xf32> to vector<16x32xf32>
    %165 = arith.mulf %160, %164 : vector<16x32xf32>
    %166 = vector.broadcast %145 : vector<1x32xf32> to vector<16x32xf32>
    %167 = arith.mulf %165, %166 : vector<16x32xf32>
    %168 = vector.broadcast %147 : vector<1x32xf32> to vector<16x32xf32>
    %169 = arith.addf %167, %168 : vector<16x32xf32>
    %c0_61 = arith.constant 0 : index
    %c0_62 = arith.constant 0 : index
    %c0_63 = arith.constant 0 : index
    %170 = vector.load %arg10[%c0_61, %c0_62, %c0_63] : memref<2x32x64xf32, #tpu.memory_space<vmem>>, vector<1x32x64xf32>
    %171 = vector.shape_cast %170 : vector<1x32x64xf32> to vector<32x64xf32>
    %cst_64 = arith.constant dense<0.000000e+00> : vector<16x64xf32>
    %172 = tpu.matmul %169, %171, %cst_64 {dimension_numbers = #tpu.dot_dimension_numbers<[1], [0], [0], [1], [0, 0, 1, 1], [], []>} : vector<16x32xf32>, vector<32x64xf32>, vector<16x64xf32> -> vector<16x64xf32>
    %c0_65 = arith.constant 0 : index
    %c0_66 = arith.constant 0 : index
    %c0_67 = arith.constant 0 : index
    %173 = vector.load %arg11[%c0_65, %c0_66, %c0_67] : memref<2x1x64xf32, #tpu.memory_space<vmem>>, vector<1x1x64xf32>
    %174 = vector.shape_cast %173 : vector<1x1x64xf32> to vector<1x64xf32>
    %175 = vector.broadcast %174 : vector<1x64xf32> to vector<16x64xf32>
    %176 = arith.addf %172, %175 : vector<16x64xf32>
    %cst_68 = arith.constant 5.000000e-01 : f32
    %177 = vector.broadcast %cst_68 : f32 to vector<16x64xf32>
    %178 = arith.mulf %177, %176 : vector<16x64xf32>
    %cst_69 = arith.constant 0.707106769 : f32
    %179 = vector.broadcast %cst_69 : f32 to vector<16x64xf32>
    %180 = arith.mulf %176, %179 : vector<16x64xf32>
    %181 = math.absf %180 : vector<16x64xf32>
    %cst_70 = arith.constant 0.327591091 : f32
    %182 = vector.broadcast %cst_70 : f32 to vector<16x64xf32>
    %183 = arith.mulf %182, %181 : vector<16x64xf32>
    %cst_71 = arith.constant 1.000000e+00 : f32
    %184 = vector.broadcast %cst_71 : f32 to vector<16x64xf32>
    %185 = arith.addf %184, %183 : vector<16x64xf32>
    %cst_72 = arith.constant 1.000000e+00 : f32
    %186 = vector.broadcast %cst_72 : f32 to vector<16x64xf32>
    %187 = arith.divf %186, %185 : vector<16x64xf32>
    %cst_73 = arith.constant 1.06140542 : f32
    %188 = vector.broadcast %cst_73 : f32 to vector<16x64xf32>
    %189 = arith.mulf %187, %188 : vector<16x64xf32>
    %cst_74 = arith.constant -1.45315206 : f32
    %190 = vector.broadcast %cst_74 : f32 to vector<16x64xf32>
    %191 = arith.addf %190, %189 : vector<16x64xf32>
    %192 = arith.mulf %187, %191 : vector<16x64xf32>
    %cst_75 = arith.constant 1.42141378 : f32
    %193 = vector.broadcast %cst_75 : f32 to vector<16x64xf32>
    %194 = arith.addf %193, %192 : vector<16x64xf32>
    %195 = arith.mulf %187, %194 : vector<16x64xf32>
    %cst_76 = arith.constant -0.284496725 : f32
    %196 = vector.broadcast %cst_76 : f32 to vector<16x64xf32>
    %197 = arith.addf %196, %195 : vector<16x64xf32>
    %198 = arith.mulf %187, %197 : vector<16x64xf32>
    %cst_77 = arith.constant 0.254829586 : f32
    %199 = vector.broadcast %cst_77 : f32 to vector<16x64xf32>
    %200 = arith.addf %199, %198 : vector<16x64xf32>
    %201 = arith.mulf %187, %200 : vector<16x64xf32>
    %cst_78 = arith.constant 0.000000e+00 : f32
    %202 = vector.broadcast %cst_78 : f32 to vector<16x64xf32>
    %203 = arith.subf %202, %181 : vector<16x64xf32>
    %204 = arith.mulf %203, %181 : vector<16x64xf32>
    %205 = math.exp %204 : vector<16x64xf32>
    %206 = arith.mulf %201, %205 : vector<16x64xf32>
    %cst_79 = arith.constant 1.000000e+00 : f32
    %207 = vector.broadcast %cst_79 : f32 to vector<16x64xf32>
    %208 = arith.subf %207, %206 : vector<16x64xf32>
    %cst_80 = arith.constant 0.000000e+00 : f32
    %209 = vector.broadcast %cst_80 : f32 to vector<16x64xf32>
    %210 = arith.cmpf olt, %180, %209 : vector<16x64xf32>
    %cst_81 = arith.constant 0.000000e+00 : f32
    %211 = vector.broadcast %cst_81 : f32 to vector<16x64xf32>
    %212 = arith.subf %211, %208 : vector<16x64xf32>
    %213 = arith.select %210, %212, %208 : vector<16x64xi1>, vector<16x64xf32>
    %cst_82 = arith.constant 1.000000e+00 : f32
    %214 = vector.broadcast %cst_82 : f32 to vector<16x64xf32>
    %215 = arith.addf %214, %213 : vector<16x64xf32>
    %216 = arith.mulf %178, %215 : vector<16x64xf32>
    %c0_83 = arith.constant 0 : index
    %c0_84 = arith.constant 0 : index
    %c0_85 = arith.constant 0 : index
    %217 = vector.load %arg12[%c0_83, %c0_84, %c0_85] : memref<2x64x32xf32, #tpu.memory_space<vmem>>, vector<1x64x32xf32>
    %218 = vector.shape_cast %217 : vector<1x64x32xf32> to vector<64x32xf32>
    %cst_86 = arith.constant dense<0.000000e+00> : vector<16x32xf32>
    %219 = tpu.matmul %216, %218, %cst_86 {dimension_numbers = #tpu.dot_dimension_numbers<[1], [0], [0], [1], [0, 0, 1, 1], [], []>} : vector<16x64xf32>, vector<64x32xf32>, vector<16x32xf32> -> vector<16x32xf32>
    %c0_87 = arith.constant 0 : index
    %c0_88 = arith.constant 0 : index
    %c0_89 = arith.constant 0 : index
    %220 = vector.load %arg13[%c0_87, %c0_88, %c0_89] : memref<2x1x32xf32, #tpu.memory_space<vmem>>, vector<1x1x32xf32>
    %221 = vector.shape_cast %220 : vector<1x1x32xf32> to vector<1x32xf32>
    %222 = vector.broadcast %221 : vector<1x32xf32> to vector<16x32xf32>
    %223 = arith.addf %219, %222 : vector<16x32xf32>
    %224 = arith.addf %169, %223 : vector<16x32xf32>
    %c0_90 = arith.constant 0 : index
    %c0_91 = arith.constant 0 : index
    %c0_92 = arith.constant 0 : index
    %225 = vector.load %arg14[%c0_90, %c0_91, %c0_92] : memref<2x1x32xf32, #tpu.memory_space<vmem>>, vector<1x1x32xf32>
    %226 = vector.shape_cast %225 : vector<1x1x32xf32> to vector<1x32xf32>
    %c0_93 = arith.constant 0 : index
    %c0_94 = arith.constant 0 : index
    %c0_95 = arith.constant 0 : index
    %227 = vector.load %arg15[%c0_93, %c0_94, %c0_95] : memref<2x1x32xf32, #tpu.memory_space<vmem>>, vector<1x1x32xf32>
    %228 = vector.shape_cast %227 : vector<1x1x32xf32> to vector<1x32xf32>
    %cst_96 = arith.constant dense<0.000000e+00> : vector<16xf32>
    %229 = vector.multi_reduction <add>, %224, %cst_96 [1] : vector<16x32xf32> to vector<16xf32>
    %230 = vector.shape_cast %229 : vector<16xf32> to vector<16x1xf32>
    %cst_97 = arith.constant 3.200000e+01 : f32
    %231 = vector.broadcast %cst_97 : f32 to vector<16x1xf32>
    %232 = arith.divf %230, %231 : vector<16x1xf32>
    %233 = vector.broadcast %232 : vector<16x1xf32> to vector<16x32xf32>
    %234 = arith.subf %224, %233 : vector<16x32xf32>
    %235 = arith.mulf %234, %234 : vector<16x32xf32>
    %cst_98 = arith.constant dense<0.000000e+00> : vector<16xf32>
    %236 = vector.multi_reduction <add>, %235, %cst_98 [1] : vector<16x32xf32> to vector<16xf32>
    %237 = vector.shape_cast %236 : vector<16xf32> to vector<16x1xf32>
    %cst_99 = arith.constant 3.200000e+01 : f32
    %238 = vector.broadcast %cst_99 : f32 to vector<16x1xf32>
    %239 = arith.divf %237, %238 : vector<16x1xf32>
    %240 = vector.broadcast %232 : vector<16x1xf32> to vector<16x32xf32>
    %241 = arith.subf %224, %240 : vector<16x32xf32>
    %cst_100 = arith.constant 9.99999996E-13 : f32
    %242 = vector.broadcast %cst_100 : f32 to vector<16x1xf32>
    %243 = arith.addf %239, %242 : vector<16x1xf32>
    %244 = math.rsqrt %243 : vector<16x1xf32>
    %245 = vector.broadcast %244 : vector<16x1xf32> to vector<16x32xf32>
    %246 = arith.mulf %241, %245 : vector<16x32xf32>
    %247 = vector.broadcast %226 : vector<1x32xf32> to vector<16x32xf32>
    %248 = arith.mulf %246, %247 : vector<16x32xf32>
    %249 = vector.broadcast %228 : vector<1x32xf32> to vector<16x32xf32>
    %250 = arith.addf %248, %249 : vector<16x32xf32>
    %c1 = arith.constant 1 : index
    %c0_101 = arith.constant 0 : index
    %c0_102 = arith.constant 0 : index
    %251 = vector.load %arg4[%c1, %c0_101, %c0_102] : memref<2x32x96xf32, #tpu.memory_space<vmem>>, vector<1x32x96xf32>
    %252 = vector.shape_cast %251 : vector<1x32x96xf32> to vector<32x96xf32>
    %cst_103 = arith.constant dense<0.000000e+00> : vector<16x96xf32>
    %253 = tpu.matmul %250, %252, %cst_103 {dimension_numbers = #tpu.dot_dimension_numbers<[1], [0], [0], [1], [0, 0, 1, 1], [], []>} : vector<16x32xf32>, vector<32x96xf32>, vector<16x96xf32> -> vector<16x96xf32>
    %c1_104 = arith.constant 1 : index
    %c0_105 = arith.constant 0 : index
    %c0_106 = arith.constant 0 : index
    %254 = vector.load %arg5[%c1_104, %c0_105, %c0_106] : memref<2x1x96xf32, #tpu.memory_space<vmem>>, vector<1x1x96xf32>
    %255 = vector.shape_cast %254 : vector<1x1x96xf32> to vector<1x96xf32>
    %256 = vector.broadcast %255 : vector<1x96xf32> to vector<16x96xf32>
    %257 = arith.addf %253, %256 : vector<16x96xf32>
    %258 = vector.extract_strided_slice %257 {offsets = [0, 0], sizes = [16, 32], strides = [1, 1]} : vector<16x96xf32> to vector<16x32xf32>
    %259 = vector.extract_strided_slice %257 {offsets = [0, 32], sizes = [16, 32], strides = [1, 1]} : vector<16x96xf32> to vector<16x32xf32>
    %260 = vector.extract_strided_slice %257 {offsets = [0, 64], sizes = [16, 32], strides = [1, 1]} : vector<16x96xf32> to vector<16x32xf32>
    %c1_107 = arith.constant 1 : index
    %c0_108 = arith.constant 0 : index
    %c0_109 = arith.constant 0 : index
    %261 = vector.load %arg6[%c1_107, %c0_108, %c0_109] : memref<2x32x32xf32, #tpu.memory_space<vmem>>, vector<1x32x32xf32>
    %262 = vector.shape_cast %261 : vector<1x32x32xf32> to vector<32x32xf32>
    %cst_110 = arith.constant 0.000000e+00 : f32
    %263 = vector.broadcast %cst_110 : f32 to vector<16x32xf32>
    %264 = vector.extract_strided_slice %258 {offsets = [0, 0], sizes = [16, 8], strides = [1, 1]} : vector<16x32xf32> to vector<16x8xf32>
    %265 = vector.shape_cast %264 : vector<16x8xf32> to vector<2x8x8xf32>
    %266 = vector.extract_strided_slice %259 {offsets = [0, 0], sizes = [16, 8], strides = [1, 1]} : vector<16x32xf32> to vector<16x8xf32>
    %267 = vector.shape_cast %266 : vector<16x8xf32> to vector<2x8x8xf32>
    %268 = vector.extract_strided_slice %260 {offsets = [0, 0], sizes = [16, 8], strides = [1, 1]} : vector<16x32xf32> to vector<16x8xf32>
    %269 = vector.shape_cast %268 : vector<16x8xf32> to vector<2x8x8xf32>
    "tpu.trace_start"() <{level = 10 : i32, message = "bqd,bkd->bqk"}> : () -> ()
    %cst_111 = arith.constant dense<0.000000e+00> : vector<2x8x8xf32>
    %270 = tpu.matmul %265, %267, %cst_111 {dimension_numbers = #tpu.dot_dimension_numbers<[2], [2], [1], [1], [0, 0, 0, 1, 1, 1], [0], [0]>} : vector<2x8x8xf32>, vector<2x8x8xf32>, vector<2x8x8xf32> -> vector<2x8x8xf32>
    "tpu.trace_stop"() : () -> ()
    %cst_112 = arith.constant 0.353553385 : f32
    %271 = vector.broadcast %cst_112 : f32 to vector<2x8x8xf32>
    %272 = arith.mulf %270, %271 : vector<2x8x8xf32>
    %273 = vector.broadcast %25 : vector<2x1x8xf32> to vector<2x8x8xf32>
    %274 = arith.addf %272, %273 : vector<2x8x8xf32>
    %cst_113 = arith.constant dense<0xFF800000> : vector<2x8xf32>
    %275 = vector.multi_reduction <maximumf>, %274, %cst_113 [2] : vector<2x8x8xf32> to vector<2x8xf32>
    %276 = vector.shape_cast %275 : vector<2x8xf32> to vector<2x8x1xf32>
    %277 = vector.broadcast %276 : vector<2x8x1xf32> to vector<2x8x8xf32>
    %278 = arith.subf %274, %277 : vector<2x8x8xf32>
    %279 = math.exp %278 : vector<2x8x8xf32>
    %cst_114 = arith.constant dense<0.000000e+00> : vector<2x8xf32>
    %280 = vector.multi_reduction <add>, %279, %cst_114 [2] : vector<2x8x8xf32> to vector<2x8xf32>
    %281 = vector.shape_cast %280 : vector<2x8xf32> to vector<2x8x1xf32>
    %282 = vector.broadcast %281 : vector<2x8x1xf32> to vector<2x8x8xf32>
    %283 = arith.divf %279, %282 : vector<2x8x8xf32>
    "tpu.trace_start"() <{level = 10 : i32, message = "bqk,bkd->bqd"}> : () -> ()
    %cst_115 = arith.constant dense<0.000000e+00> : vector<2x8x8xf32>
    %284 = tpu.matmul %283, %269, %cst_115 {dimension_numbers = #tpu.dot_dimension_numbers<[2], [1], [1], [2], [0, 0, 0, 1, 1, 2], [0], [0]>} : vector<2x8x8xf32>, vector<2x8x8xf32>, vector<2x8x8xf32> -> vector<2x8x8xf32>
    "tpu.trace_stop"() : () -> ()
    %285 = vector.shape_cast %284 : vector<2x8x8xf32> to vector<16x8xf32>
    %286 = vector.extract_strided_slice %262 {offsets = [0, 0], sizes = [8, 32], strides = [1, 1]} : vector<32x32xf32> to vector<8x32xf32>
    %cst_116 = arith.constant dense<0.000000e+00> : vector<16x32xf32>
    %287 = tpu.matmul %285, %286, %cst_116 {dimension_numbers = #tpu.dot_dimension_numbers<[1], [0], [0], [1], [0, 0, 1, 1], [], []>} : vector<16x8xf32>, vector<8x32xf32>, vector<16x32xf32> -> vector<16x32xf32>
    %288 = arith.addf %263, %287 : vector<16x32xf32>
    %289 = vector.extract_strided_slice %258 {offsets = [0, 8], sizes = [16, 8], strides = [1, 1]} : vector<16x32xf32> to vector<16x8xf32>
    %290 = vector.shape_cast %289 : vector<16x8xf32> to vector<2x8x8xf32>
    %291 = vector.extract_strided_slice %259 {offsets = [0, 8], sizes = [16, 8], strides = [1, 1]} : vector<16x32xf32> to vector<16x8xf32>
    %292 = vector.shape_cast %291 : vector<16x8xf32> to vector<2x8x8xf32>
    %293 = vector.extract_strided_slice %260 {offsets = [0, 8], sizes = [16, 8], strides = [1, 1]} : vector<16x32xf32> to vector<16x8xf32>
    %294 = vector.shape_cast %293 : vector<16x8xf32> to vector<2x8x8xf32>
    "tpu.trace_start"() <{level = 10 : i32, message = "bqd,bkd->bqk"}> : () -> ()
    %cst_117 = arith.constant dense<0.000000e+00> : vector<2x8x8xf32>
    %295 = tpu.matmul %290, %292, %cst_117 {dimension_numbers = #tpu.dot_dimension_numbers<[2], [2], [1], [1], [0, 0, 0, 1, 1, 1], [0], [0]>} : vector<2x8x8xf32>, vector<2x8x8xf32>, vector<2x8x8xf32> -> vector<2x8x8xf32>
    "tpu.trace_stop"() : () -> ()
    %cst_118 = arith.constant 0.353553385 : f32
    %296 = vector.broadcast %cst_118 : f32 to vector<2x8x8xf32>
    %297 = arith.mulf %295, %296 : vector<2x8x8xf32>
    %298 = vector.broadcast %25 : vector<2x1x8xf32> to vector<2x8x8xf32>
    %299 = arith.addf %297, %298 : vector<2x8x8xf32>
    %cst_119 = arith.constant dense<0xFF800000> : vector<2x8xf32>
    %300 = vector.multi_reduction <maximumf>, %299, %cst_119 [2] : vector<2x8x8xf32> to vector<2x8xf32>
    %301 = vector.shape_cast %300 : vector<2x8xf32> to vector<2x8x1xf32>
    %302 = vector.broadcast %301 : vector<2x8x1xf32> to vector<2x8x8xf32>
    %303 = arith.subf %299, %302 : vector<2x8x8xf32>
    %304 = math.exp %303 : vector<2x8x8xf32>
    %cst_120 = arith.constant dense<0.000000e+00> : vector<2x8xf32>
    %305 = vector.multi_reduction <add>, %304, %cst_120 [2] : vector<2x8x8xf32> to vector<2x8xf32>
    %306 = vector.shape_cast %305 : vector<2x8xf32> to vector<2x8x1xf32>
    %307 = vector.broadcast %306 : vector<2x8x1xf32> to vector<2x8x8xf32>
    %308 = arith.divf %304, %307 : vector<2x8x8xf32>
    "tpu.trace_start"() <{level = 10 : i32, message = "bqk,bkd->bqd"}> : () -> ()
    %cst_121 = arith.constant dense<0.000000e+00> : vector<2x8x8xf32>
    %309 = tpu.matmul %308, %294, %cst_121 {dimension_numbers = #tpu.dot_dimension_numbers<[2], [1], [1], [2], [0, 0, 0, 1, 1, 2], [0], [0]>} : vector<2x8x8xf32>, vector<2x8x8xf32>, vector<2x8x8xf32> -> vector<2x8x8xf32>
    "tpu.trace_stop"() : () -> ()
    %310 = vector.shape_cast %309 : vector<2x8x8xf32> to vector<16x8xf32>
    %311 = vector.extract_strided_slice %262 {offsets = [8, 0], sizes = [8, 32], strides = [1, 1]} : vector<32x32xf32> to vector<8x32xf32>
    %cst_122 = arith.constant dense<0.000000e+00> : vector<16x32xf32>
    %312 = tpu.matmul %310, %311, %cst_122 {dimension_numbers = #tpu.dot_dimension_numbers<[1], [0], [0], [1], [0, 0, 1, 1], [], []>} : vector<16x8xf32>, vector<8x32xf32>, vector<16x32xf32> -> vector<16x32xf32>
    %313 = arith.addf %288, %312 : vector<16x32xf32>
    %314 = vector.extract_strided_slice %258 {offsets = [0, 16], sizes = [16, 8], strides = [1, 1]} : vector<16x32xf32> to vector<16x8xf32>
    %315 = vector.shape_cast %314 : vector<16x8xf32> to vector<2x8x8xf32>
    %316 = vector.extract_strided_slice %259 {offsets = [0, 16], sizes = [16, 8], strides = [1, 1]} : vector<16x32xf32> to vector<16x8xf32>
    %317 = vector.shape_cast %316 : vector<16x8xf32> to vector<2x8x8xf32>
    %318 = vector.extract_strided_slice %260 {offsets = [0, 16], sizes = [16, 8], strides = [1, 1]} : vector<16x32xf32> to vector<16x8xf32>
    %319 = vector.shape_cast %318 : vector<16x8xf32> to vector<2x8x8xf32>
    "tpu.trace_start"() <{level = 10 : i32, message = "bqd,bkd->bqk"}> : () -> ()
    %cst_123 = arith.constant dense<0.000000e+00> : vector<2x8x8xf32>
    %320 = tpu.matmul %315, %317, %cst_123 {dimension_numbers = #tpu.dot_dimension_numbers<[2], [2], [1], [1], [0, 0, 0, 1, 1, 1], [0], [0]>} : vector<2x8x8xf32>, vector<2x8x8xf32>, vector<2x8x8xf32> -> vector<2x8x8xf32>
    "tpu.trace_stop"() : () -> ()
    %cst_124 = arith.constant 0.353553385 : f32
    %321 = vector.broadcast %cst_124 : f32 to vector<2x8x8xf32>
    %322 = arith.mulf %320, %321 : vector<2x8x8xf32>
    %323 = vector.broadcast %25 : vector<2x1x8xf32> to vector<2x8x8xf32>
    %324 = arith.addf %322, %323 : vector<2x8x8xf32>
    %cst_125 = arith.constant dense<0xFF800000> : vector<2x8xf32>
    %325 = vector.multi_reduction <maximumf>, %324, %cst_125 [2] : vector<2x8x8xf32> to vector<2x8xf32>
    %326 = vector.shape_cast %325 : vector<2x8xf32> to vector<2x8x1xf32>
    %327 = vector.broadcast %326 : vector<2x8x1xf32> to vector<2x8x8xf32>
    %328 = arith.subf %324, %327 : vector<2x8x8xf32>
    %329 = math.exp %328 : vector<2x8x8xf32>
    %cst_126 = arith.constant dense<0.000000e+00> : vector<2x8xf32>
    %330 = vector.multi_reduction <add>, %329, %cst_126 [2] : vector<2x8x8xf32> to vector<2x8xf32>
    %331 = vector.shape_cast %330 : vector<2x8xf32> to vector<2x8x1xf32>
    %332 = vector.broadcast %331 : vector<2x8x1xf32> to vector<2x8x8xf32>
    %333 = arith.divf %329, %332 : vector<2x8x8xf32>
    "tpu.trace_start"() <{level = 10 : i32, message = "bqk,bkd->bqd"}> : () -> ()
    %cst_127 = arith.constant dense<0.000000e+00> : vector<2x8x8xf32>
    %334 = tpu.matmul %333, %319, %cst_127 {dimension_numbers = #tpu.dot_dimension_numbers<[2], [1], [1], [2], [0, 0, 0, 1, 1, 2], [0], [0]>} : vector<2x8x8xf32>, vector<2x8x8xf32>, vector<2x8x8xf32> -> vector<2x8x8xf32>
    "tpu.trace_stop"() : () -> ()
    %335 = vector.shape_cast %334 : vector<2x8x8xf32> to vector<16x8xf32>
    %336 = vector.extract_strided_slice %262 {offsets = [16, 0], sizes = [8, 32], strides = [1, 1]} : vector<32x32xf32> to vector<8x32xf32>
    %cst_128 = arith.constant dense<0.000000e+00> : vector<16x32xf32>
    %337 = tpu.matmul %335, %336, %cst_128 {dimension_numbers = #tpu.dot_dimension_numbers<[1], [0], [0], [1], [0, 0, 1, 1], [], []>} : vector<16x8xf32>, vector<8x32xf32>, vector<16x32xf32> -> vector<16x32xf32>
    %338 = arith.addf %313, %337 : vector<16x32xf32>
    %339 = vector.extract_strided_slice %258 {offsets = [0, 24], sizes = [16, 8], strides = [1, 1]} : vector<16x32xf32> to vector<16x8xf32>
    %340 = vector.shape_cast %339 : vector<16x8xf32> to vector<2x8x8xf32>
    %341 = vector.extract_strided_slice %259 {offsets = [0, 24], sizes = [16, 8], strides = [1, 1]} : vector<16x32xf32> to vector<16x8xf32>
    %342 = vector.shape_cast %341 : vector<16x8xf32> to vector<2x8x8xf32>
    %343 = vector.extract_strided_slice %260 {offsets = [0, 24], sizes = [16, 8], strides = [1, 1]} : vector<16x32xf32> to vector<16x8xf32>
    %344 = vector.shape_cast %343 : vector<16x8xf32> to vector<2x8x8xf32>
    "tpu.trace_start"() <{level = 10 : i32, message = "bqd,bkd->bqk"}> : () -> ()
    %cst_129 = arith.constant dense<0.000000e+00> : vector<2x8x8xf32>
    %345 = tpu.matmul %340, %342, %cst_129 {dimension_numbers = #tpu.dot_dimension_numbers<[2], [2], [1], [1], [0, 0, 0, 1, 1, 1], [0], [0]>} : vector<2x8x8xf32>, vector<2x8x8xf32>, vector<2x8x8xf32> -> vector<2x8x8xf32>
    "tpu.trace_stop"() : () -> ()
    %cst_130 = arith.constant 0.353553385 : f32
    %346 = vector.broadcast %cst_130 : f32 to vector<2x8x8xf32>
    %347 = arith.mulf %345, %346 : vector<2x8x8xf32>
    %348 = vector.broadcast %25 : vector<2x1x8xf32> to vector<2x8x8xf32>
    %349 = arith.addf %347, %348 : vector<2x8x8xf32>
    %cst_131 = arith.constant dense<0xFF800000> : vector<2x8xf32>
    %350 = vector.multi_reduction <maximumf>, %349, %cst_131 [2] : vector<2x8x8xf32> to vector<2x8xf32>
    %351 = vector.shape_cast %350 : vector<2x8xf32> to vector<2x8x1xf32>
    %352 = vector.broadcast %351 : vector<2x8x1xf32> to vector<2x8x8xf32>
    %353 = arith.subf %349, %352 : vector<2x8x8xf32>
    %354 = math.exp %353 : vector<2x8x8xf32>
    %cst_132 = arith.constant dense<0.000000e+00> : vector<2x8xf32>
    %355 = vector.multi_reduction <add>, %354, %cst_132 [2] : vector<2x8x8xf32> to vector<2x8xf32>
    %356 = vector.shape_cast %355 : vector<2x8xf32> to vector<2x8x1xf32>
    %357 = vector.broadcast %356 : vector<2x8x1xf32> to vector<2x8x8xf32>
    %358 = arith.divf %354, %357 : vector<2x8x8xf32>
    "tpu.trace_start"() <{level = 10 : i32, message = "bqk,bkd->bqd"}> : () -> ()
    %cst_133 = arith.constant dense<0.000000e+00> : vector<2x8x8xf32>
    %359 = tpu.matmul %358, %344, %cst_133 {dimension_numbers = #tpu.dot_dimension_numbers<[2], [1], [1], [2], [0, 0, 0, 1, 1, 2], [0], [0]>} : vector<2x8x8xf32>, vector<2x8x8xf32>, vector<2x8x8xf32> -> vector<2x8x8xf32>
    "tpu.trace_stop"() : () -> ()
    %360 = vector.shape_cast %359 : vector<2x8x8xf32> to vector<16x8xf32>
    %361 = vector.extract_strided_slice %262 {offsets = [24, 0], sizes = [8, 32], strides = [1, 1]} : vector<32x32xf32> to vector<8x32xf32>
    %cst_134 = arith.constant dense<0.000000e+00> : vector<16x32xf32>
    %362 = tpu.matmul %360, %361, %cst_134 {dimension_numbers = #tpu.dot_dimension_numbers<[1], [0], [0], [1], [0, 0, 1, 1], [], []>} : vector<16x8xf32>, vector<8x32xf32>, vector<16x32xf32> -> vector<16x32xf32>
    %363 = arith.addf %338, %362 : vector<16x32xf32>
    %c1_135 = arith.constant 1 : index
    %c0_136 = arith.constant 0 : index
    %c0_137 = arith.constant 0 : index
    %364 = vector.load %arg7[%c1_135, %c0_136, %c0_137] : memref<2x1x32xf32, #tpu.memory_space<vmem>>, vector<1x1x32xf32>
    %365 = vector.shape_cast %364 : vector<1x1x32xf32> to vector<1x32xf32>
    %366 = vector.broadcast %365 : vector<1x32xf32> to vector<16x32xf32>
    %367 = arith.addf %363, %366 : vector<16x32xf32>
    %368 = arith.addf %250, %367 : vector<16x32xf32>
    %c1_138 = arith.constant 1 : index
    %c0_139 = arith.constant 0 : index
    %c0_140 = arith.constant 0 : index
    %369 = vector.load %arg8[%c1_138, %c0_139, %c0_140] : memref<2x1x32xf32, #tpu.memory_space<vmem>>, vector<1x1x32xf32>
    %370 = vector.shape_cast %369 : vector<1x1x32xf32> to vector<1x32xf32>
    %c1_141 = arith.constant 1 : index
    %c0_142 = arith.constant 0 : index
    %c0_143 = arith.constant 0 : index
    %371 = vector.load %arg9[%c1_141, %c0_142, %c0_143] : memref<2x1x32xf32, #tpu.memory_space<vmem>>, vector<1x1x32xf32>
    %372 = vector.shape_cast %371 : vector<1x1x32xf32> to vector<1x32xf32>
    %cst_144 = arith.constant dense<0.000000e+00> : vector<16xf32>
    %373 = vector.multi_reduction <add>, %368, %cst_144 [1] : vector<16x32xf32> to vector<16xf32>
    %374 = vector.shape_cast %373 : vector<16xf32> to vector<16x1xf32>
    %cst_145 = arith.constant 3.200000e+01 : f32
    %375 = vector.broadcast %cst_145 : f32 to vector<16x1xf32>
    %376 = arith.divf %374, %375 : vector<16x1xf32>
    %377 = vector.broadcast %376 : vector<16x1xf32> to vector<16x32xf32>
    %378 = arith.subf %368, %377 : vector<16x32xf32>
    %379 = arith.mulf %378, %378 : vector<16x32xf32>
    %cst_146 = arith.constant dense<0.000000e+00> : vector<16xf32>
    %380 = vector.multi_reduction <add>, %379, %cst_146 [1] : vector<16x32xf32> to vector<16xf32>
    %381 = vector.shape_cast %380 : vector<16xf32> to vector<16x1xf32>
    %cst_147 = arith.constant 3.200000e+01 : f32
    %382 = vector.broadcast %cst_147 : f32 to vector<16x1xf32>
    %383 = arith.divf %381, %382 : vector<16x1xf32>
    %384 = vector.broadcast %376 : vector<16x1xf32> to vector<16x32xf32>
    %385 = arith.subf %368, %384 : vector<16x32xf32>
    %cst_148 = arith.constant 9.99999996E-13 : f32
    %386 = vector.broadcast %cst_148 : f32 to vector<16x1xf32>
    %387 = arith.addf %383, %386 : vector<16x1xf32>
    %388 = math.rsqrt %387 : vector<16x1xf32>
    %389 = vector.broadcast %388 : vector<16x1xf32> to vector<16x32xf32>
    %390 = arith.mulf %385, %389 : vector<16x32xf32>
    %391 = vector.broadcast %370 : vector<1x32xf32> to vector<16x32xf32>
    %392 = arith.mulf %390, %391 : vector<16x32xf32>
    %393 = vector.broadcast %372 : vector<1x32xf32> to vector<16x32xf32>
    %394 = arith.addf %392, %393 : vector<16x32xf32>
    %c1_149 = arith.constant 1 : index
    %c0_150 = arith.constant 0 : index
    %c0_151 = arith.constant 0 : index
    %395 = vector.load %arg10[%c1_149, %c0_150, %c0_151] : memref<2x32x64xf32, #tpu.memory_space<vmem>>, vector<1x32x64xf32>
    %396 = vector.shape_cast %395 : vector<1x32x64xf32> to vector<32x64xf32>
    %cst_152 = arith.constant dense<0.000000e+00> : vector<16x64xf32>
    %397 = tpu.matmul %394, %396, %cst_152 {dimension_numbers = #tpu.dot_dimension_numbers<[1], [0], [0], [1], [0, 0, 1, 1], [], []>} : vector<16x32xf32>, vector<32x64xf32>, vector<16x64xf32> -> vector<16x64xf32>
    %c1_153 = arith.constant 1 : index
    %c0_154 = arith.constant 0 : index
    %c0_155 = arith.constant 0 : index
    %398 = vector.load %arg11[%c1_153, %c0_154, %c0_155] : memref<2x1x64xf32, #tpu.memory_space<vmem>>, vector<1x1x64xf32>
    %399 = vector.shape_cast %398 : vector<1x1x64xf32> to vector<1x64xf32>
    %400 = vector.broadcast %399 : vector<1x64xf32> to vector<16x64xf32>
    %401 = arith.addf %397, %400 : vector<16x64xf32>
    %cst_156 = arith.constant 5.000000e-01 : f32
    %402 = vector.broadcast %cst_156 : f32 to vector<16x64xf32>
    %403 = arith.mulf %402, %401 : vector<16x64xf32>
    %cst_157 = arith.constant 0.707106769 : f32
    %404 = vector.broadcast %cst_157 : f32 to vector<16x64xf32>
    %405 = arith.mulf %401, %404 : vector<16x64xf32>
    %406 = math.absf %405 : vector<16x64xf32>
    %cst_158 = arith.constant 0.327591091 : f32
    %407 = vector.broadcast %cst_158 : f32 to vector<16x64xf32>
    %408 = arith.mulf %407, %406 : vector<16x64xf32>
    %cst_159 = arith.constant 1.000000e+00 : f32
    %409 = vector.broadcast %cst_159 : f32 to vector<16x64xf32>
    %410 = arith.addf %409, %408 : vector<16x64xf32>
    %cst_160 = arith.constant 1.000000e+00 : f32
    %411 = vector.broadcast %cst_160 : f32 to vector<16x64xf32>
    %412 = arith.divf %411, %410 : vector<16x64xf32>
    %cst_161 = arith.constant 1.06140542 : f32
    %413 = vector.broadcast %cst_161 : f32 to vector<16x64xf32>
    %414 = arith.mulf %412, %413 : vector<16x64xf32>
    %cst_162 = arith.constant -1.45315206 : f32
    %415 = vector.broadcast %cst_162 : f32 to vector<16x64xf32>
    %416 = arith.addf %415, %414 : vector<16x64xf32>
    %417 = arith.mulf %412, %416 : vector<16x64xf32>
    %cst_163 = arith.constant 1.42141378 : f32
    %418 = vector.broadcast %cst_163 : f32 to vector<16x64xf32>
    %419 = arith.addf %418, %417 : vector<16x64xf32>
    %420 = arith.mulf %412, %419 : vector<16x64xf32>
    %cst_164 = arith.constant -0.284496725 : f32
    %421 = vector.broadcast %cst_164 : f32 to vector<16x64xf32>
    %422 = arith.addf %421, %420 : vector<16x64xf32>
    %423 = arith.mulf %412, %422 : vector<16x64xf32>
    %cst_165 = arith.constant 0.254829586 : f32
    %424 = vector.broadcast %cst_165 : f32 to vector<16x64xf32>
    %425 = arith.addf %424, %423 : vector<16x64xf32>
    %426 = arith.mulf %412, %425 : vector<16x64xf32>
    %cst_166 = arith.constant 0.000000e+00 : f32
    %427 = vector.broadcast %cst_166 : f32 to vector<16x64xf32>
    %428 = arith.subf %427, %406 : vector<16x64xf32>
    %429 = arith.mulf %428, %406 : vector<16x64xf32>
    %430 = math.exp %429 : vector<16x64xf32>
    %431 = arith.mulf %426, %430 : vector<16x64xf32>
    %cst_167 = arith.constant 1.000000e+00 : f32
    %432 = vector.broadcast %cst_167 : f32 to vector<16x64xf32>
    %433 = arith.subf %432, %431 : vector<16x64xf32>
    %cst_168 = arith.constant 0.000000e+00 : f32
    %434 = vector.broadcast %cst_168 : f32 to vector<16x64xf32>
    %435 = arith.cmpf olt, %405, %434 : vector<16x64xf32>
    %cst_169 = arith.constant 0.000000e+00 : f32
    %436 = vector.broadcast %cst_169 : f32 to vector<16x64xf32>
    %437 = arith.subf %436, %433 : vector<16x64xf32>
    %438 = arith.select %435, %437, %433 : vector<16x64xi1>, vector<16x64xf32>
    %cst_170 = arith.constant 1.000000e+00 : f32
    %439 = vector.broadcast %cst_170 : f32 to vector<16x64xf32>
    %440 = arith.addf %439, %438 : vector<16x64xf32>
    %441 = arith.mulf %403, %440 : vector<16x64xf32>
    %c1_171 = arith.constant 1 : index
    %c0_172 = arith.constant 0 : index
    %c0_173 = arith.constant 0 : index
    %442 = vector.load %arg12[%c1_171, %c0_172, %c0_173] : memref<2x64x32xf32, #tpu.memory_space<vmem>>, vector<1x64x32xf32>
    %443 = vector.shape_cast %442 : vector<1x64x32xf32> to vector<64x32xf32>
    %cst_174 = arith.constant dense<0.000000e+00> : vector<16x32xf32>
    %444 = tpu.matmul %441, %443, %cst_174 {dimension_numbers = #tpu.dot_dimension_numbers<[1], [0], [0], [1], [0, 0, 1, 1], [], []>} : vector<16x64xf32>, vector<64x32xf32>, vector<16x32xf32> -> vector<16x32xf32>
    %c1_175 = arith.constant 1 : index
    %c0_176 = arith.constant 0 : index
    %c0_177 = arith.constant 0 : index
    %445 = vector.load %arg13[%c1_175, %c0_176, %c0_177] : memref<2x1x32xf32, #tpu.memory_space<vmem>>, vector<1x1x32xf32>
    %446 = vector.shape_cast %445 : vector<1x1x32xf32> to vector<1x32xf32>
    %447 = vector.broadcast %446 : vector<1x32xf32> to vector<16x32xf32>
    %448 = arith.addf %444, %447 : vector<16x32xf32>
    %449 = arith.addf %394, %448 : vector<16x32xf32>
    %c1_178 = arith.constant 1 : index
    %c0_179 = arith.constant 0 : index
    %c0_180 = arith.constant 0 : index
    %450 = vector.load %arg14[%c1_178, %c0_179, %c0_180] : memref<2x1x32xf32, #tpu.memory_space<vmem>>, vector<1x1x32xf32>
    %451 = vector.shape_cast %450 : vector<1x1x32xf32> to vector<1x32xf32>
    %c1_181 = arith.constant 1 : index
    %c0_182 = arith.constant 0 : index
    %c0_183 = arith.constant 0 : index
    %452 = vector.load %arg15[%c1_181, %c0_182, %c0_183] : memref<2x1x32xf32, #tpu.memory_space<vmem>>, vector<1x1x32xf32>
    %453 = vector.shape_cast %452 : vector<1x1x32xf32> to vector<1x32xf32>
    %cst_184 = arith.constant dense<0.000000e+00> : vector<16xf32>
    %454 = vector.multi_reduction <add>, %449, %cst_184 [1] : vector<16x32xf32> to vector<16xf32>
    %455 = vector.shape_cast %454 : vector<16xf32> to vector<16x1xf32>
    %cst_185 = arith.constant 3.200000e+01 : f32
    %456 = vector.broadcast %cst_185 : f32 to vector<16x1xf32>
    %457 = arith.divf %455, %456 : vector<16x1xf32>
    %458 = vector.broadcast %457 : vector<16x1xf32> to vector<16x32xf32>
    %459 = arith.subf %449, %458 : vector<16x32xf32>
    %460 = arith.mulf %459, %459 : vector<16x32xf32>
    %cst_186 = arith.constant dense<0.000000e+00> : vector<16xf32>
    %461 = vector.multi_reduction <add>, %460, %cst_186 [1] : vector<16x32xf32> to vector<16xf32>
    %462 = vector.shape_cast %461 : vector<16xf32> to vector<16x1xf32>
    %cst_187 = arith.constant 3.200000e+01 : f32
    %463 = vector.broadcast %cst_187 : f32 to vector<16x1xf32>
    %464 = arith.divf %462, %463 : vector<16x1xf32>
    %465 = vector.broadcast %457 : vector<16x1xf32> to vector<16x32xf32>
    %466 = arith.subf %449, %465 : vector<16x32xf32>
    %cst_188 = arith.constant 9.99999996E-13 : f32
    %467 = vector.broadcast %cst_188 : f32 to vector<16x1xf32>
    %468 = arith.addf %464, %467 : vector<16x1xf32>
    %469 = math.rsqrt %468 : vector<16x1xf32>
    %470 = vector.broadcast %469 : vector<16x1xf32> to vector<16x32xf32>
    %471 = arith.mulf %466, %470 : vector<16x32xf32>
    %472 = vector.broadcast %451 : vector<1x32xf32> to vector<16x32xf32>
    %473 = arith.mulf %471, %472 : vector<16x32xf32>
    %474 = vector.broadcast %453 : vector<1x32xf32> to vector<16x32xf32>
    %475 = arith.addf %473, %474 : vector<16x32xf32>
    %476 = tpu.iota {dimensions = array<i32: 1>} : vector<2x16xi32>
    %477 = tpu.iota {dimensions = array<i32: 0>} : vector<2x16xi32>
    %c8_i32 = arith.constant 8 : i32
    %478 = vector.broadcast %c8_i32 : i32 to vector<2x16xi32>
    %479 = arith.muli %477, %478 : vector<2x16xi32>
    %480 = arith.cmpi eq, %476, %479 : vector<2x16xi32>
    %481 = arith.extui %480 : vector<2x16xi1> to vector<2x16xi32>
    %482 = arith.sitofp %481 : vector<2x16xi32> to vector<2x16xf32>
    %cst_189 = arith.constant dense<0.000000e+00> : vector<2x32xf32>
    %483 = tpu.matmul %482, %475, %cst_189 {dimension_numbers = #tpu.dot_dimension_numbers<[1], [0], [0], [1], [0, 0, 1, 1], [], []>} : vector<2x16xf32>, vector<16x32xf32>, vector<2x32xf32> -> vector<2x32xf32>
    %c0_190 = arith.constant 0 : index
    %c0_191 = arith.constant 0 : index
    %484 = vector.load %arg16[%c0_190, %c0_191] : memref<32x32xf32, #tpu.memory_space<vmem>>, vector<32x32xf32>
    %cst_192 = arith.constant dense<0.000000e+00> : vector<2x32xf32>
    %485 = tpu.matmul %483, %484, %cst_192 {dimension_numbers = #tpu.dot_dimension_numbers<[1], [0], [0], [1], [0, 0, 1, 1], [], []>} : vector<2x32xf32>, vector<32x32xf32>, vector<2x32xf32> -> vector<2x32xf32>
    %c0_193 = arith.constant 0 : index
    %c0_194 = arith.constant 0 : index
    %486 = vector.load %arg17[%c0_193, %c0_194] : memref<1x32xf32, #tpu.memory_space<vmem>>, vector<1x32xf32>
    %487 = vector.broadcast %486 : vector<1x32xf32> to vector<2x32xf32>
    %488 = arith.addf %485, %487 : vector<2x32xf32>
    %489 = math.tanh %488 : vector<2x32xf32>
    %c0_195 = arith.constant 0 : index
    %c0_196 = arith.constant 0 : index
    %490 = vector.load %arg18[%c0_195, %c0_196] : memref<32x5xf32, #tpu.memory_space<vmem>>, vector<32x5xf32>
    %cst_197 = arith.constant dense<0.000000e+00> : vector<2x5xf32>
    %491 = tpu.matmul %489, %490, %cst_197 {dimension_numbers = #tpu.dot_dimension_numbers<[1], [0], [0], [1], [0, 0, 1, 1], [], []>} : vector<2x32xf32>, vector<32x5xf32>, vector<2x5xf32> -> vector<2x5xf32>
    %c0_198 = arith.constant 0 : index
    %c0_199 = arith.constant 0 : index
    %492 = vector.load %arg19[%c0_198, %c0_199] : memref<1x5xf32, #tpu.memory_space<vmem>>, vector<1x5xf32>
    %493 = vector.broadcast %492 : vector<1x5xf32> to vector<2x5xf32>
    %494 = arith.addf %491, %493 : vector<2x5xf32>
    %c0_200 = arith.constant 0 : index
    %c0_201 = arith.constant 0 : index
    %495 = vector.load %arg20[%c0_200, %c0_201] : memref<2x5xf32, #tpu.memory_space<vmem>>, vector<2x5xf32>
    tpu.vector_store %arg20[%c0_200, %c0_201], %494 {strides = array<i32>} : memref<2x5xf32, #tpu.memory_space<vmem>>, vector<2x5xf32>,
    return
  }
}

</mosaic_0001>

<bundles_post_ra>
// kernel: multilabel_bert_forward.1
= control target key start
LH: loop header
LB: loop body
LE: loop exit
PB: predicated region body
PF: predicated region fallthrough
CT: control target
= control target key end

     0   :  { %s6186_s0 = inlined_call_operand.vmem [shape: f32[16,32], index: 0, kind: input, shape index: {}]   ;;  %s6187_s1 = inlined_call_operand.vmem [shape: f32[2,1,8], index: 1, kind: input, shape index: {}]   ;;  %s6188_s2 = inlined_call_operand.vmem [shape: f32[1,32], index: 2, kind: input, shape index: {}]   ;;  %s6189_s3 = inlined_call_operand.vmem [shape: f32[1,32], index: 3, kind: input, shape index: {}]   ;;  %s6190_s4 = inlined_call_operand.vmem [shape: f32[2,32,96], index: 4, kind: input, shape index: {}]   ;;  %s6191_s5 = inlined_call_operand.vmem [shape: f32[2,1,96], index: 5, kind: input, shape index: {}]   ;;  %s6192_s6 = inlined_call_operand.vmem [shape: f32[2,32,32], index: 6, kind: input, shape index: {}]   ;;  %s6193_s7 = inlined_call_operand.vmem [shape: f32[2,1,32], index: 7, kind: input, shape index: {}]   ;;  %s6194_s8 = inlined_call_operand.vmem [shape: f32[2,1,32], index: 8, kind: input, shape index: {}]   ;;  %s6195_s9 = inlined_call_operand.vmem [shape: f32[2,1,32], index: 9, kind: input, shape index: {}]   ;;  %s6196_s10 = inlined_call_operand.vmem [shape: f32[2,32,64], index: 10, kind: input, shape index: {}]   ;;  %s6197_s11 = inlined_call_operand.vmem [shape: f32[2,1,64], index: 11, kind: input, shape index: {}]   ;;  %s6198_s12 = inlined_call_operand.vmem [shape: f32[2,64,32], index: 12, kind: input, shape index: {}]   ;;  %s6199_s13 = inlined_call_operand.vmem [shape: f32[2,1,32], index: 13, kind: input, shape index: {}]   ;;  %s6200_s14 = inlined_call_operand.vmem [shape: f32[2,1,32], index: 14, kind: input, shape index: {}]   ;;  %s6201_s15 = inlined_call_operand.vmem [shape: f32[2,1,32], index: 15, kind: input, shape index: {}]   ;;  %s6202_s16 = inlined_call_operand.vmem [shape: f32[32,32], index: 16, kind: input, shape index: {}]   ;;  %s6203_s17 = inlined_call_operand.vmem [shape: f32[1,32], index: 17, kind: input, shape index: {}]   ;;  %s6204_s18 = inlined_call_operand.vmem [shape: f32[32,5], index: 18, kind: input, shape index: {}]   ;;  %s6205_s19 = inlined_call_operand.vmem [shape: f32[1,5], index: 19, kind: input, shape index: {}]   ;;  %s6206_s20 = inlined_call_operand.hbm [shape: f32[2,5], index: 20, kind: output, shape index: {}]  }
   0x1   :  { %6222 = sst [smem:[#allocation5_spill]] %s6186_s0 }
   0x2   :  { %6223 = sst [smem:[#allocation6_spill]] %s6187_s1 }
   0x3   :  { %6224 = sst [smem:[#allocation7_spill]] %s6188_s2 }
   0x4   :  { %6225 = sst [smem:[#allocation8_spill]] %s6189_s3 }
   0x5   :  { %6226 = sst [smem:[#allocation9_spill]] %s6190_s4 }
   0x6   :  { %s6227_s23 = sld [smem:[#allocation5_spill]]  ;;  %vm70_vm0 = vcmask 261120  }
   0xc   :  { %v66_v0 = vld [vmem:[%s6227_s23] sm:$0xff]  ;;  %v67_v1 = vld [vmem:[%s6227_s23 + $0x8] sm:$0xff] }
   0xd   :  { %25 = vsyncpa [#allocation3], 0  ;;  %v71_v2 = vsel %vm70_vm0, %v66_v0, 0.0  ;;  %v74_v3 = vsel %vm70_vm0, %v67_v1, 0.0  ;;  %s6228_s26 = sld [smem:[#allocation9_spill]]  ;;  %s6229_s22 = sld [smem:[#allocation7_spill]] }
   0xe   :  { %72 = vadd.xlane.f32.xlu0 %v71_v2  ;;  %s6230_s2 = sld [smem:[#allocation8_spill]]  ;;  %v5431_v36 = vmov 0.0   ;;  %vm5432_vm1 = vmmov 0   ;;  %v4613_v37 = vld [vmem:[%s6191_s5] ss:$0 sm:$0xff]  ;;  %s5433_s27 = smov 96  }
   0xf   :  { %4897 = vmatprep.subr.mxu1 %v5431_v36  ;;  %4899 = vmatprep.mubr.msk.f32.mxu1 %vm5432_vm1, %v5431_v36  ;;  %vm215_vm2 = vcmask 64512   ;;  %s6231_s29 = sld [smem:[#allocation6_spill]]  ;;  %s5434_s30 = smov 88   ;;  %vm2103_vm5 = vcmask 523264   ;;  %vm4352_vm9 = vcmask 130048   ;;  %vm4595_vm10 = vcmask 33792  }
  0x10   :  { %s5435_s0 = smov 120   ;;  %s5437_s23 = smov 64  }
  0x11   :  { %s6220_s24 = smov 56   ;;  %s6216_s25 = smov 48  }
  0x12   :  { %75 = vadd.xlane.f32.xlu0 %v74_v3  ;;  %s6210_s3 = smov 72   ;;  %s6214_s28 = smov 104  }
  0x13   :  { %v116_v14 = vld [vmem:[%s6228_s26] sm:$0xff]  ;;  %v117_v15 = vld [vmem:[%s6228_s26 + $0x8] sm:$0xff]  ;;  %v118_v16 = vld [vmem:[%s6228_s26 + $0x10] sm:$0xff]  ;;  %s6212_s21 = smov 40  }
  0x14   :  { %v5197_v17 = vpack.c.bf16 %v117_v15, %v116_v14  ;;  %v119_v18 = vld [vmem:[%s6228_s26 + $0x18] sm:$0xff]  ;;  %v4611_v27 = vld [vmem:[%s6229_s22] ss:$0 sm:$0xff]  ;;  %s5436_s22 = smov 80  }
  0x15   :  { %v5201_v19 = vpack.c.bf16 %v119_v18, %v118_v16  ;;  %v4612_v29 = vld [vmem:[%s6230_s2] ss:$0 sm:$0xff]  ;;  %v5619_v47 = vld [vmem:[%s6231_s29 + $0x1] ss:$0 sm:$0xff]  ;;  %s6218_s2 = smov 112  }
  0x16   :  { %5198 = vmatprep.subr.bf16.mxu0 %v5197_v17  ;;  %v5630_v53 = vld [vmem:[%s6231_s29] ss:$0 sm:$0xff] }
  0x17   :  { %5200 = vmatpush3.bf16.msra.mxu0 %v5197_v17 }
  0x18   :  { %5202 = vmatprep.subr.bf16.mxu0 %v5201_v19 }
  0x1b   :  { %5204 = vmatpush3.bf16.msra.mxu0 %v5201_v19 }
  0x1c   :  { %4907 = vmatprep.subr.mxu0 %v5431_v36 }
  0x9b   :  { %v73_v4 = vpop.xlane.xlu0 %72 }
  0x9c   :  { %v78_v5 = vmul.f32 0.03125, %v73_v4 }
  0x9e   :  { %v80_v6 = vsub.f32 %v66_v0, %v78_v5 }
  0x9f   :  { %v76_v7 = vpop.xlane.xlu0 %75 }
  0xa0   :  { %v79_v8 = vmul.f32 0.03125, %v76_v7  ;;  %v82_v9 = vmul.f32 %v80_v6, %v80_v6 }
  0xa2   :  { %v81_v10 = vsub.f32 %v67_v1, %v79_v8  ;;  %v84_v11 = vsel %vm70_vm0, %v82_v9, 0.0 }
  0xa3   :  { %85 = vadd.xlane.f32.xlu1 %v84_v11 }
  0xa4   :  { %v83_v12 = vmul.f32 %v81_v10, %v81_v10 }
  0xa6   :  { %v87_v13 = vsel %vm70_vm0, %v83_v12, 0.0 }
  0xa7   :  { %88 = vadd.xlane.f32.xlu1 %v87_v13 }
 0x130   :  { %v86_v20 = vpop.xlane.xlu1 %85 }
 0x131   :  { %v90_v21 = vmul.f32 0.03125, %v86_v20 }
 0x133   :  { %v92_v22 = vadd.f32 1e-12, %v90_v21 }
 0x134   :  { %v89_v23 = vpop.xlane.xlu1 %88 }
 0x135   :  { %5303 = vrsqrt.f32 %v92_v22  ;;  %v91_v24 = vmul.f32 0.03125, %v89_v23 }
 0x137   :  { %v93_v25 = vadd.f32 1e-12, %v91_v24 }
 0x139   :  { %5305 = vrsqrt.f32 %v93_v25 }
 0x13f   :  { %v5304_v26 = vpop.eup %5303 }
 0x140   :  { %v96_v28 = vmul.f32 %v5304_v26, %v80_v6 }
 0x142   :  { %v104_v30 = vmul.f32 %v4611_v27, %v96_v28 }
 0x143   :  { %v5306_v31 = vpop.eup %5305 }
 0x144   :  { %v97_v32 = vmul.f32 %v5306_v31, %v81_v10  ;;  %v5579_v33 = vadd.f32 %v4612_v29, %v104_v30 }
 0x146   :  { %v105_v34 = vmul.f32 %v4611_v27, %v97_v32  ;;  %4894 = vmatprep.mubr.msk.f32.mxu0 %vm70_vm0, %v5579_v33 }
 0x148   :  { %v5583_v35 = vadd.f32 %v4612_v29, %v105_v34 }
 0x14a   :  { %4895 = vmatmul.mubr.msk.f32.vlgmr.msra.gmra.mrb[0].mxu0 %vm70_vm0, %v5583_v35 }
 0x14b   :  { %4909 = vmatprep.mubr.msk.f32.mxu0 %vm5432_vm1, %v5431_v36 }
 0x21d   :  { %v4896_v38 = vpop.f32.mrb[0].mxu0 }
 0x21e   :  { %v5596_v39 = vadd.f32 %v4896_v38, %v4613_v37  ;;  %v199_v40 = vpop.f32.mrb[1].mxu0 }
 0x21f   :  { %v5598_v41 = vadd.f32 %v4613_v37, %v199_v40 }
 0x220   :  { %291 = vrot.lane.b32.xlu1 %v5596_v39, %s5433_s27 }
 0x221   :  { %213 = vrot.lane.b32.xlu0 %v5598_v41, %s5433_s27 }
 0x292   :  { %v292_v43 = vpop.permute.xlu1 %291 }
 0x293   :  { %v214_v42 = vpop.permute.xlu0 %213 }
 0x294   :  { %4898 = vmatpush3.xpose.msk.msra.mxu1 %vm215_vm2, %v214_v42 }
 0x295   :  { %4902 = vmatprep.subr.mxu1 %v5431_v36 }
 0x297   :  { %4900 = vmatmul.mubr.msk.f32.vlgmr.msra.gmra.mrb[0].mxu1 %vm215_vm2, %v5598_v41 }
 0x298   :  { %4903 = vmatpush3.xpose.msk.msra.mxu1 %vm215_vm2, %v292_v43  ;;  %4904 = vmatprep.mubr.msk.f32.mxu1 %vm5432_vm1, %v5431_v36 }
 0x299   :  { %4912 = vmatprep.subr.mxu1 %v5431_v36 }
 0x29b   :  { %4905 = vmatmul.mubr.msk.f32.vlgmr.msra.gmra.mrb[2].mxu1 %vm215_vm2, %v5596_v39 }
 0x29c   :  { %4914 = vmatprep.mubr.msk.f32.mxu1 %vm5432_vm1, %v5431_v36 }
 0x36a   :  { %v286_v44 = vpop.f32.mrb[0].mxu1 }
 0x36b   :  { %v4901_v45 = vpop.f32.mrb[1].mxu1  ;;  %v367_v52 = vmul.f32 0.35355338, %v286_v44 }
 0x36d   :  { %v381_v54 = vadd.f32 %v5630_v53, %v367_v52 }
 0x36e   :  { %v363_v46 = vpop.f32.mrb[2].mxu1 }
 0x36f   :  { %v368_v48 = vmul.f32 0.35355338, %v363_v46  ;;  %v4906_v49 = vpop.f32.mrb[3].mxu1  ;;  %v383_v55 = vsel %vm215_vm2, %v381_v54, -inf }
 0x371   :  { %v382_v50 = vadd.f32 %v5619_v47, %v368_v48 }
 0x373   :  { %v386_v51 = vsel %vm215_vm2, %v382_v50, -inf }
 0x374   :  { %387 = vmax.xlane.f32.xlu1 %v386_v51 }
 0x385   :  { %637 = vrot.lane.b32.xlu1 %v5596_v39, %s5434_s30 }
 0x389   :  { %635 = vrot.lane.b32.xlu1 %v5596_v39, %s5435_s0 }
 0x3ad   :  { %384 = vmax.xlane.f32.xlu1 %v383_v55 }
 0x3be   :  { %559 = vrot.lane.b32.xlu1 %v5598_v41, %s5434_s30 }
 0x3c2   :  { %557 = vrot.lane.b32.xlu1 %v5598_v41, %s5435_s0 }
 0x3c6   :  { %1055 = vrot.lane.b32.xlu1 %v5598_v41, %s5436_s22 }
 0x401   :  { %v388_v56 = vpop.xlane.xlu1 %387 }
 0x402   :  { %v390_v57 = vsub.f32 %v382_v50, %v388_v56 }
 0x404   :  { %v393_v58 = vmul.f32 1.442695, %v390_v57 }
 0x405   :  { %v638_v61 = vpop.permute.xlu1 %637 }
 0x406   :  { %5307 = vpow2.f32 %v393_v58 }
 0x409   :  { %v636_v62 = vpop.permute.xlu1 %635 }
 0x410   :  { %v5308_v59 = vpop.eup %5307 }
 0x411   :  { %v398_v60 = vsel %vm215_vm2, %v5308_v59, 0.0 }
 0x412   :  { %399 = vadd.xlane.f32.xlu0 %v398_v60 }
 0x428   :  { %481 = vrot.lane.b32.xlu0 %v5596_v39, %s5437_s23 }
 0x43a   :  { %v385_v63 = vpop.xlane.xlu1 %384 }
 0x43b   :  { %v389_v0 = vsub.f32 %v381_v54, %v385_v63 }
 0x43d   :  { %v391_v1 = vmul.f32 1.442695, %v389_v0 }
 0x43e   :  { %v560_v11 = vpop.permute.xlu1 %559 }
 0x43f   :  { %5309 = vpow2.f32 %v391_v1 }
 0x442   :  { %v558_v13 = vpop.permute.xlu1 %557 }
 0x446   :  { %v1056_v37 = vpop.permute.xlu1 %1055 }
 0x449   :  { %v5310_v2 = vpop.eup %5309 }
 0x44a   :  { %v395_v3 = vsel %vm215_vm2, %v5310_v2, 0.0 }
 0x44b   :  { %396 = vadd.xlane.f32.xlu0 %v395_v3 }
 0x461   :  { %405 = vrot.lane.b32.xlu0 %v5598_v41, %s5437_s23 }
 0x49f   :  { %v400_v4 = vpop.xlane.xlu0 %399 }
 0x4a0   :  { %5311 = vrcp.f32 %v400_v4 }
 0x4a3   :  { %v482_v5 = vpop.permute.xlu0 %481 }
 0x4a4   :  { %4913 = vmatpush3.msra.mxu1 %v482_v5 }
 0x4a5   :  { %4922 = vmatprep.subr.mxu1 %v5431_v36 }
 0x4aa   :  { %v5312_v6 = vpop.eup %5311 }
 0x4ab   :  { %v404_v7 = vmul.f32 %v5312_v6, %v5308_v59  ;;  %v209_v6 = vld [vmem:[%s6192_s6 + $0x8] sm:$0xff] }
 0x4ad   :  { %4915 = vmatmul.mubr.msk.f32.vlgmr.msra.gmra.mrb[4].mxu1 %vm215_vm2, %v404_v7  ;;  %v208_v7 = vld [vmem:[%s6192_s6] sm:$0xff] }
 0x4ae   :  { %4923 = vmatpush3.xpose.msk.msra.mxu1 %vm215_vm2, %v638_v61  ;;  %4924 = vmatprep.mubr.msk.f32.mxu1 %vm5432_vm1, %v5431_v36 }
 0x4af   :  { %4932 = vmatprep.subr.mxu1 %v5431_v36 }
 0x4b1   :  { %4925 = vmatmul.mubr.msk.f32.vlgmr.msra.gmra.mrb[6].mxu1 %vm215_vm2, %v636_v62 }
 0x4b2   :  { %4934 = vmatprep.mubr.msk.f32.mxu1 %vm5432_vm1, %v5431_v36 }
 0x4d8   :  { %v397_v8 = vpop.xlane.xlu0 %396 }
 0x4d9   :  { %5313 = vrcp.f32 %v397_v8 }
 0x4dc   :  { %v406_v9 = vpop.permute.xlu0 %405 }
 0x4dd   :  { %4908 = vmatpush3.msra.mxu0 %v406_v9 }
 0x4de   :  { %4917 = vmatprep.subr.mxu0 %v5431_v36 }
 0x4e3   :  { %v5314_v10 = vpop.eup %5313 }
 0x4e4   :  { %v402_v12 = vmul.f32 %v5314_v10, %v5310_v2 }
 0x4e6   :  { %4910 = vmatmul.mubr.msk.f32.vlgmr.msra.gmra.mrb[2].mxu0 %vm215_vm2, %v402_v12 }
 0x4e7   :  { %4918 = vmatpush3.xpose.msk.msra.mxu0 %vm215_vm2, %v560_v11  ;;  %4919 = vmatprep.mubr.msk.f32.mxu0 %vm5432_vm1, %v5431_v36 }
 0x4e8   :  { %4927 = vmatprep.subr.mxu0 %v5431_v36 }
 0x4ea   :  { %4920 = vmatmul.mubr.msk.f32.vlgmr.msra.gmra.mrb[4].mxu0 %vm215_vm2, %v558_v13 }
 0x4eb   :  { %4929 = vmatprep.mubr.msk.f32.mxu0 %vm5432_vm1, %v5431_v36 }
 0x580   :  { %v5664_v14 = vpop.f32.mrb[4].mxu1 }
 0x581   :  { %v4916_v15 = vpop.f32.mrb[5].mxu1 }
 0x584   :  { %v709_v16 = vpop.f32.mrb[6].mxu1 }
 0x585   :  { %v714_v17 = vmul.f32 0.35355338, %v709_v16  ;;  %v4926_v18 = vpop.f32.mrb[7].mxu1 }
 0x587   :  { %v716_v19 = vadd.f32 %v5619_v47, %v714_v17 }
 0x589   :  { %v720_v20 = vsel %vm215_vm2, %v716_v19, -inf }
 0x58a   :  { %721 = vmax.xlane.f32.xlu0 %v720_v20 }
 0x5a0   :  { %815 = vrot.lane.b32.xlu0 %v5596_v39, %s6220_s24 }
 0x5a4   :  { %1053 = vrot.lane.b32.xlu0 %v5598_v41, %s6218_s2 }
 0x5a8   :  { %1131 = vrot.lane.b32.xlu0 %v5596_v39, %s6218_s2 }
 0x5b9   :  { %v5674_v21 = vpop.f32.mrb[2].mxu0 }
 0x5ba   :  { %v4911_v22 = vpop.f32.mrb[3].mxu0 }
 0x5bd   :  { %v631_v23 = vpop.f32.mrb[4].mxu0 }
 0x5be   :  { %v4921_v24 = vpop.f32.mrb[5].mxu0  ;;  %v713_v31 = vmul.f32 0.35355338, %v631_v23 }
 0x5bf   :  { %v210_v24 = vld [vmem:[%s6192_s6 + $0x10] sm:$0xff] }
 0x5c0   :  { %v715_v32 = vadd.f32 %v5630_v53, %v713_v31 }
 0x5c2   :  { %v717_v34 = vsel %vm215_vm2, %v715_v32, -inf }
 0x617   :  { %v722_v25 = vpop.xlane.xlu0 %721 }
 0x618   :  { %v724_v26 = vsub.f32 %v716_v19, %v722_v25 }
 0x61a   :  { %v727_v27 = vmul.f32 1.442695, %v724_v26 }
 0x61b   :  { %v816_v28 = vpop.permute.xlu0 %815 }
 0x61c   :  { %5315 = vpow2.f32 %v727_v27  ;;  %4933 = vmatpush3.msra.mxu1 %v816_v28 }
 0x61d   :  { %4947 = vmatprep.subr.mxu1 %v5431_v36 }
 0x61f   :  { %v1054_v43 = vpop.permute.xlu0 %1053 }
 0x623   :  { %v1132_v45 = vpop.permute.xlu0 %1131 }
 0x626   :  { %v5316_v29 = vpop.eup %5315 }
 0x627   :  { %v732_v30 = vsel %vm215_vm2, %v5316_v29, 0.0 }
 0x628   :  { %733 = vadd.xlane.f32.xlu1 %v732_v30 }
 0x639   :  { %1133 = vrot.lane.b32.xlu1 %v5596_v39, %s5436_s22 }
 0x65d   :  { %718 = vmax.xlane.f32.xlu1 %v717_v34 }
 0x6b5   :  { %v734_v38 = vpop.xlane.xlu1 %733 }
 0x6b6   :  { %5317 = vrcp.f32 %v734_v38 }
 0x6b9   :  { %v1134_v44 = vpop.permute.xlu1 %1133 }
 0x6c0   :  { %v5318_v40 = vpop.eup %5317 }
 0x6c1   :  { %v738_v42 = vmul.f32 %v5318_v40, %v5316_v29 }
 0x6c3   :  { %4935 = vmatmul.mubr.msk.f32.vlgmr.msra.gmra.mrb[8].mxu1 %vm215_vm2, %v738_v42 }
 0x6c4   :  { %4948 = vmatpush3.xpose.msk.msra.mxu1 %vm215_vm2, %v1056_v37  ;;  %4949 = vmatprep.mubr.msk.f32.mxu1 %vm5432_vm1, %v5431_v36 }
 0x6c5   :  { %4952 = vmatprep.subr.mxu1 %v5431_v36 }
 0x6c7   :  { %4950 = vmatmul.mubr.msk.f32.vlgmr.msra.gmra.mrb[10].mxu1 %vm215_vm2, %v1054_v43 }
 0x6c8   :  { %4953 = vmatpush3.xpose.msk.msra.mxu1 %vm215_vm2, %v1134_v44  ;;  %4954 = vmatprep.mubr.msk.f32.mxu1 %vm5432_vm1, %v5431_v36 }
 0x6c9   :  { %4962 = vmatprep.subr.mxu1 %v5431_v36 }
 0x6cb   :  { %4955 = vmatmul.mubr.msk.f32.vlgmr.msra.gmra.mrb[12].mxu1 %vm215_vm2, %v1132_v45 }
 0x6cc   :  { %4964 = vmatprep.mubr.msk.f32.mxu1 %vm5432_vm1, %v5431_v36 }
 0x6ea   :  { %v719_v46 = vpop.xlane.xlu1 %718 }
 0x6eb   :  { %v723_v48 = vsub.f32 %v715_v32, %v719_v46 }
 0x6ed   :  { %v725_v49 = vmul.f32 1.442695, %v723_v48 }
 0x6ef   :  { %5319 = vpow2.f32 %v725_v49 }
 0x6f9   :  { %v5320_v50 = vpop.eup %5319 }
 0x6fa   :  { %v729_v51 = vsel %vm215_vm2, %v5320_v50, 0.0 }
 0x6fb   :  { %730 = vadd.xlane.f32.xlu0 %v729_v51 }
 0x711   :  { %739 = vrot.lane.b32.xlu0 %v5598_v41, %s6220_s24 }
 0x715   :  { %1311 = vrot.lane.b32.xlu0 %v5596_v39, %s6216_s25 }
 0x719   :  { %1472 = vrot.lane.b32.xlu0 %v5598_v41, %s6210_s3 }
 0x71d   :  { %1550 = vrot.lane.b32.xlu0 %v5596_v39, %s6210_s3  ;;  %s6236_s3 = smov 104  }
 0x721   :  { %1470 = vrot.lane.b32.xlu0 %v5598_v41, %s6214_s28 }
 0x788   :  { %v731_v52 = vpop.xlane.xlu0 %730 }
 0x789   :  { %5321 = vrcp.f32 %v731_v52 }
 0x78c   :  { %v740_v54 = vpop.permute.xlu0 %739 }
 0x78d   :  { %4928 = vmatpush3.msra.mxu0 %v740_v54 }
 0x78e   :  { %4937 = vmatprep.subr.mxu0 %v209_v6 }
 0x790   :  { %v1312_v55 = vpop.permute.xlu0 %1311 }
 0x791   :  { %4963 = vmatpush3.msra.mxu1 %v1312_v55 }
 0x792   :  { %4972 = vmatprep.subr.mxu1 %v5431_v36 }
 0x793   :  { %v5322_v56 = vpop.eup %5321 }
 0x794   :  { %v736_v57 = vmul.f32 %v5322_v56, %v5320_v50  ;;  %v1473_v26 = vpop.permute.xlu0 %1472 }
 0x796   :  { %4930 = vmatmul.mubr.msk.f32.vlgmr.msra.gmra.mrb[6].mxu0 %vm215_vm2, %v736_v57  ;;  %v887_v58 = vpop.f32.mrb[8].mxu1 }
 0x797   :  { %v4936_v59 = vpop.f32.mrb[9].mxu1  ;;  %4938 = vmatpush3.msra.mxu0 %v209_v6  ;;  %v211_v6 = vld [vmem:[%s6192_s6 + $0x18] sm:$0xff] }
 0x798   :  { %4942 = vmatprep.subr.mxu0 %v208_v7  ;;  %v1551_v28 = vpop.permute.xlu0 %1550 }
 0x79a   :  { %v1127_v60 = vpop.f32.mrb[10].mxu1 }
 0x79b   :  { %v1209_v61 = vmul.f32 0.35355338, %v1127_v60  ;;  %v4951_v62 = vpop.f32.mrb[11].mxu1 }
 0x79c   :  { %v1471_v30 = vpop.permute.xlu0 %1470 }
 0x79d   :  { %v1211_v63 = vadd.f32 %v5630_v53, %v1209_v61 }
 0x79e   :  { %v1205_v0 = vpop.f32.mrb[12].mxu1 }
 0x79f   :  { %v1210_v1 = vmul.f32 0.35355338, %v1205_v0  ;;  %v4956_v2 = vpop.f32.mrb[13].mxu1  ;;  %v1213_v3 = vsel %vm215_vm2, %v1211_v63, -inf }
 0x7a0   :  { %1214 = vmax.xlane.f32.xlu1 %v1213_v3 }
 0x7a1   :  { %v1212_v4 = vadd.f32 %v5619_v47, %v1210_v1 }
 0x7a3   :  { %v1216_v5 = vsel %vm215_vm2, %v1212_v4, -inf }
 0x7a4   :  { %1217 = vmax.xlane.f32.xlu1 %v1216_v5 }
 0x82d   :  { %v1215_v8 = vpop.xlane.xlu1 %1214 }
 0x82e   :  { %v1219_v9 = vsub.f32 %v1211_v63, %v1215_v8 }
 0x830   :  { %v1221_v10 = vmul.f32 1.442695, %v1219_v9 }
 0x831   :  { %v1218_v11 = vpop.xlane.xlu1 %1217 }
 0x832   :  { %5323 = vpow2.f32 %v1221_v10  ;;  %v1220_v12 = vsub.f32 %v1212_v4, %v1218_v11  ;;  %v4650_v10 = vld [vmem:[%s6193_s7] ss:$0 sm:$0xff] }
 0x834   :  { %v1223_v13 = vmul.f32 1.442695, %v1220_v12 }
 0x836   :  { %5325 = vpow2.f32 %v1223_v13 }
 0x83c   :  { %v5324_v15 = vpop.eup %5323 }
 0x83d   :  { %v1225_v16 = vsel %vm215_vm2, %v5324_v15, 0.0 }
 0x83e   :  { %1226 = vadd.xlane.f32.xlu1 %v1225_v16 }
 0x840   :  { %v5326_v17 = vpop.eup %5325 }
 0x841   :  { %v1228_v18 = vsel %vm215_vm2, %v5326_v17, 0.0 }
 0x842   :  { %1229 = vadd.xlane.f32.xlu1 %v1228_v18 }
 0x853   :  { %1235 = vrot.lane.b32.xlu1 %v5598_v41, %s6216_s25 }
 0x857   :  { %1548 = vrot.lane.b32.xlu1 %v5596_v39, %s6214_s28 }
 0x869   :  { %v811_v19 = vpop.f32.mrb[6].mxu0 }
 0x86a   :  { %v4931_v20 = vpop.f32.mrb[7].mxu0  ;;  %4939 = vmatprep.mubr.msk.f32.mxu0 %vm215_vm2, %v811_v19 }
 0x86b   :  { %4940 = vmatmul.mubr.msk.f32.vlgmr.msra.gmra.mrb[8].mxu0 %vm215_vm2, %v887_v58 }
 0x86c   :  { %4944 = vmatprep.mubr.msk.f32.mxu0 %vm215_vm2, %v5674_v21  ;;  %4943 = vmatpush3.msra.mxu0 %v208_v7 }
 0x86d   :  { %4957 = vmatprep.subr.mxu0 %v5431_v36 }
 0x873   :  { %4945 = vmatmul.mubr.msk.f32.vlgmr.msra.gmra.mrb[8].mxu0 %vm215_vm2, %v5664_v14 }
 0x874   :  { %4959 = vmatprep.mubr.msk.f32.mxu0 %vm5432_vm1, %v5431_v36 }
 0x8cb   :  { %v1227_v22 = vpop.xlane.xlu1 %1226 }
 0x8cc   :  { %5327 = vrcp.f32 %v1227_v22 }
 0x8cf   :  { %v1230_v23 = vpop.xlane.xlu1 %1229 }
 0x8d0   :  { %5329 = vrcp.f32 %v1230_v23 }
 0x8d3   :  { %v1236_v25 = vpop.permute.xlu1 %1235 }
 0x8d4   :  { %4958 = vmatpush3.msra.mxu0 %v1236_v25 }
 0x8d5   :  { %4967 = vmatprep.subr.mxu0 %v210_v24 }
 0x8d6   :  { %v5328_v21 = vpop.eup %5327 }
 0x8d7   :  { %v1232_v27 = vmul.f32 %v5328_v21, %v5324_v15  ;;  %v1549_v38 = vpop.permute.xlu1 %1548 }
 0x8d9   :  { %4960 = vmatmul.mubr.msk.f32.vlgmr.msra.gmra.mrb[10].mxu0 %vm215_vm2, %v1232_v27 }
 0x8da   :  { %v5330_v14 = vpop.eup %5329  ;;  %4968 = vmatpush3.msra.mxu0 %v210_v24 }
 0x8db   :  { %v1234_v29 = vmul.f32 %v5330_v14, %v5326_v17  ;;  %4977 = vmatprep.subr.mxu0 %v5431_v36 }
 0x8dd   :  { %4965 = vmatmul.mubr.msk.f32.vlgmr.msra.gmra.mrb[14].mxu1 %vm215_vm2, %v1234_v29 }
 0x8de   :  { %4973 = vmatpush3.xpose.msk.msra.mxu1 %vm215_vm2, %v1473_v26  ;;  %4974 = vmatprep.mubr.msk.f32.mxu1 %vm5432_vm1, %v5431_v36 }
 0x8df   :  { %4982 = vmatprep.subr.mxu1 %v5431_v36 }
 0x8e1   :  { %4975 = vmatmul.mubr.msk.f32.vlgmr.msra.gmra.mrb[16].mxu1 %vm215_vm2, %v1471_v30  ;;  %v1944_v30 = vld [vmem:[%s6196_s10 + $0x10] sm:$0xff] }
 0x8e2   :  { %4984 = vmatprep.mubr.msk.f32.mxu1 %vm5432_vm1, %v5431_v36 }
 0x9ac   :  { %v1307_v31 = vpop.f32.mrb[10].mxu0 }
 0x9ad   :  { %v4961_v32 = vpop.f32.mrb[11].mxu0  ;;  %4969 = vmatprep.mubr.msk.f32.mxu0 %vm215_vm2, %v1307_v31  ;;  %v1945_v31 = vld [vmem:[%s6196_s10 + $0x18] sm:$0xff] }
 0x9ae   :  { %v5209_v32 = vpack.c.bf16 %v1945_v31, %v1944_v30 }
 0x9b0   :  { %v1383_v34 = vpop.f32.mrb[14].mxu1 }
 0x9b1   :  { %v4966_v37 = vpop.f32.mrb[15].mxu1  ;;  %4970 = vmatmul.mubr.msk.f32.vlgmr.msra.gmra.mrb[8].mxu0 %vm215_vm2, %v1383_v34 }
 0x9b2   :  { %4978 = vmatpush3.xpose.msk.msra.mxu0 %vm215_vm2, %v1551_v28  ;;  %4979 = vmatprep.mubr.msk.f32.mxu0 %vm5432_vm1, %v5431_v36  ;;  %v1943_v28 = vld [vmem:[%s6196_s10 + $0x8] sm:$0xff] }
 0x9b3   :  { %4987 = vmatprep.subr.mxu0 %v5431_v36 }
 0x9b4   :  { %v1544_v40 = vpop.f32.mrb[16].mxu1 }
 0x9b5   :  { %v1626_v42 = vmul.f32 0.35355338, %v1544_v40  ;;  %v4976_v43 = vpop.f32.mrb[17].mxu1  ;;  %4980 = vmatmul.mubr.msk.f32.vlgmr.msra.gmra.mrb[12].mxu0 %vm215_vm2, %v1549_v38 }
 0x9b6   :  { %4989 = vmatprep.mubr.msk.f32.mxu0 %vm5432_vm1, %v5431_v36 }
 0x9b7   :  { %v1628_v44 = vadd.f32 %v5630_v53, %v1626_v42 }
 0x9b9   :  { %v1630_v45 = vsel %vm215_vm2, %v1628_v44, -inf }
 0x9ba   :  { %1631 = vmax.xlane.f32.xlu0 %v1630_v45  ;;  %v4651_v45 = vld [vmem:[%s6194_s8] ss:$0 sm:$0xff] }
 0xa47   :  { %v1632_v46 = vpop.xlane.xlu0 %1631 }
 0xa48   :  { %v1636_v48 = vsub.f32 %v1628_v44, %v1632_v46 }
 0xa4a   :  { %v1638_v49 = vmul.f32 1.442695, %v1636_v48 }
 0xa4c   :  { %5331 = vpow2.f32 %v1638_v49 }
 0xa56   :  { %v5332_v50 = vpop.eup %5331 }
 0xa57   :  { %v1642_v51 = vsel %vm215_vm2, %v5332_v50, 0.0 }
 0xa58   :  { %1643 = vadd.xlane.f32.xlu0 %v1642_v51 }
 0xa88   :  { %v1622_v52 = vpop.f32.mrb[12].mxu0 }
 0xa89   :  { %v1627_v54 = vmul.f32 0.35355338, %v1622_v52  ;;  %v4981_v55 = vpop.f32.mrb[13].mxu0 }
 0xa8b   :  { %v1629_v56 = vadd.f32 %v5619_v47, %v1627_v54 }
 0xa8d   :  { %v1633_v57 = vsel %vm215_vm2, %v1629_v56, -inf }
 0xa8e   :  { %1634 = vmax.xlane.f32.xlu1 %v1633_v57  ;;  %v2089_v57 = vld [vmem:[%s6198_s12 + $0x8] sm:$0xff] }
 0xa9f   :  { %1728 = vrot.lane.b32.xlu1 %v5596_v39, %s6212_s21 }
 0xae5   :  { %v1644_v0 = vpop.xlane.xlu0 %1643 }
 0xb1b   :  { %v1635_v58 = vpop.xlane.xlu1 %1634 }
 0xb1c   :  { %v1637_v59 = vsub.f32 %v1629_v56, %v1635_v58  ;;  %v2088_v56 = vld [vmem:[%s6198_s12] sm:$0xff] }
 0xb1d   :  { %v5213_v58 = vpack.c.bf16 %v2089_v57, %v2088_v56 }
 0xb1e   :  { %v1640_v60 = vmul.f32 1.442695, %v1637_v59  ;;  %v2090_v59 = vld [vmem:[%s6198_s12 + $0x10] sm:$0xff] }
 0xb1f   :  { %v1729_v61 = vpop.permute.xlu1 %1728 }
 0xb20   :  { %5333 = vpow2.f32 %v1640_v60  ;;  %4988 = vmatpush3.msra.mxu0 %v1729_v61  ;;  %v2091_v60 = vld [vmem:[%s6198_s12 + $0x18] sm:$0xff] }
 0xb21   :  { %5335 = vrcp.f32 %v1644_v0  ;;  %4992 = vmatprep.subr.mxu0 %v211_v6  ;;  %v5217_v61 = vpack.c.bf16 %v2091_v60, %v2090_v59 }
 0xb2a   :  { %v5334_v62 = vpop.eup %5333 }
 0xb2b   :  { %v1645_v63 = vsel %vm215_vm2, %v5334_v62, 0.0  ;;  %v5336_v2 = vpop.eup %5335 }
 0xb2c   :  { %1646 = vadd.xlane.f32.xlu0 %v1645_v63  ;;  %v1649_v3 = vmul.f32 %v5336_v2, %v5332_v50  ;;  %v4652_v50 = vld [vmem:[%s6195_s9] ss:$0 sm:$0xff]  ;;  %v2093_v63 = vld [vmem:[%s6198_s12 + $0x28] sm:$0xff]  ;;  %v2095_v2 = vld [vmem:[%s6198_s12 + $0x38] sm:$0xff] }
 0xb42   :  { %1652 = vrot.lane.b32.xlu0 %v5598_v41, %s6212_s21  ;;  %s6237_s21 = smov 40  }
 0xbb9   :  { %v1647_v1 = vpop.xlane.xlu0 %1646 }
 0xbba   :  { %5337 = vrcp.f32 %v1647_v1  ;;  %v2094_v1 = vld [vmem:[%s6198_s12 + $0x30] sm:$0xff] }
 0xbbd   :  { %v1653_v39 = vpop.permute.xlu0 %1652 }
 0xbbe   :  { %4983 = vmatpush3.msra.mxu1 %v1653_v39  ;;  %v4653_v39 = vld [vmem:[%s6197_s11] ss:$0 sm:$0xff] }
 0xbbf   :  { %4985 = vmatmul.mubr.msk.f32.vlgmr.msra.gmra.mrb[18].mxu1 %vm215_vm2, %v1649_v3  ;;  %v5225_v3 = vpack.c.bf16 %v2095_v2, %v2094_v1 }
 0xbc4   :  { %v5338_v4 = vpop.eup %5337 }
 0xbc5   :  { %v1651_v5 = vmul.f32 %v5338_v4, %v5334_v62  ;;  %v2092_v62 = vld [vmem:[%s6198_s12 + $0x20] sm:$0xff] }
 0xbc6   :  { %v5221_v0 = vpack.c.bf16 %v2093_v63, %v2092_v62 }
 0xbc7   :  { %4990 = vmatmul.mubr.msk.f32.vlgmr.msra.gmra.mrb[14].mxu0 %vm215_vm2, %v1651_v5 }
 0xbc8   :  { %4993 = vmatpush3.msra.mxu0 %v211_v6 }
 0xbc9   :  { %5214 = vmatprep.subr.bf16.mxu0 %v5213_v58 }
 0xc92   :  { %v1724_v41 = vpop.f32.mrb[18].mxu1 }
 0xc93   :  { %v4986_v7 = vpop.f32.mrb[19].mxu1  ;;  %4994 = vmatprep.mubr.msk.f32.mxu0 %vm215_vm2, %v1724_v41 }
 0xc9a   :  { %v1800_v8 = vpop.f32.mrb[14].mxu0 }
 0xc9b   :  { %v4991_v9 = vpop.f32.mrb[15].mxu0  ;;  %4995 = vmatmul.mubr.msk.f32.vlgmr.msra.gmra.mrb[8].mxu0 %vm215_vm2, %v1800_v8 }
 0xc9c   :  { %5216 = vmatpush3.bf16.msra.mxu0 %v5213_v58 }
 0xc9d   :  { %5218 = vmatprep.subr.bf16.mxu0 %v5217_v61 }
 0xca0   :  { %5220 = vmatpush3.bf16.msra.mxu0 %v5217_v61 }
 0xca1   :  { %5222 = vmatprep.subr.bf16.mxu0 %v5221_v0 }
 0xca4   :  { %5224 = vmatpush3.bf16.msra.mxu0 %v5221_v0  ;;  %v4656_v0 = vld [vmem:[%s6199_s13] ss:$0 sm:$0xff] }
 0xca5   :  { %5226 = vmatprep.subr.bf16.mxu0 %v5225_v3 }
 0xca8   :  { %5228 = vmatpush3.bf16.msra.mxu0 %v5225_v3 }
 0xca9   :  { %5048 = vmatprep.subr.mxu0 %v5431_v36 }
 0xd6e   :  { %v4996_v11 = vpop.f32.mrb[8].mxu0 }
 0xd6f   :  { %v1895_v12 = vadd.f32 %v4996_v11, %v4650_v10  ;;  %v1876_v13 = vpop.f32.mrb[9].mxu0 }
 0xd70   :  { %v1894_v15 = vadd.f32 %v4650_v10, %v1876_v13 }
 0xd71   :  { %v1897_v16 = vadd.f32 %v1895_v12, %v5583_v35 }
 0xd72   :  { %v1896_v17 = vadd.f32 %v1894_v15, %v5579_v33  ;;  %v1942_v33 = vld [vmem:[%s6196_s10] sm:$0xff] }
 0xd73   :  { %v1903_v18 = vsel %vm70_vm0, %v1897_v16, 0.0  ;;  %v5205_v29 = vpack.c.bf16 %v1943_v28, %v1942_v33 }
 0xd74   :  { %1904 = vadd.xlane.f32.xlu0 %v1903_v18  ;;  %v1900_v19 = vsel %vm70_vm0, %v1896_v17, 0.0 }
 0xd75   :  { %1901 = vadd.xlane.f32.xlu1 %v1900_v19  ;;  %5206 = vmatprep.subr.bf16.mxu1 %v5205_v29 }
 0xd76   :  { %5208 = vmatpush3.bf16.msra.mxu1 %v5205_v29 }
 0xd77   :  { %5210 = vmatprep.subr.bf16.mxu1 %v5209_v32 }
 0xd7a   :  { %5212 = vmatpush3.bf16.msra.mxu1 %v5209_v32 }
 0xe01   :  { %v1905_v20 = vpop.xlane.xlu0 %1904 }
 0xe02   :  { %v1907_v22 = vmul.f32 0.03125, %v1905_v20  ;;  %v1902_v23 = vpop.xlane.xlu1 %1901 }
 0xe03   :  { %v1906_v24 = vmul.f32 0.03125, %v1902_v23 }
 0xe04   :  { %v1909_v25 = vsub.f32 %v1897_v16, %v1907_v22 }
 0xe05   :  { %v1908_v26 = vsub.f32 %v1896_v17, %v1906_v24 }
 0xe06   :  { %v1911_v21 = vmul.f32 %v1909_v25, %v1909_v25 }
 0xe07   :  { %v1910_v27 = vmul.f32 %v1908_v26, %v1908_v26 }
 0xe08   :  { %v1915_v14 = vsel %vm70_vm0, %v1911_v21, 0.0 }
 0xe09   :  { %1916 = vadd.xlane.f32.xlu1 %v1915_v14  ;;  %v1912_v35 = vsel %vm70_vm0, %v1910_v27, 0.0 }
 0xe0a   :  { %1913 = vadd.xlane.f32.xlu0 %v1912_v35 }
 0xe96   :  { %v1917_v34 = vpop.xlane.xlu1 %1916 }
 0xe97   :  { %v1919_v37 = vmul.f32 0.03125, %v1917_v34  ;;  %v1914_v38 = vpop.xlane.xlu0 %1913 }
 0xe98   :  { %v1918_v40 = vmul.f32 0.03125, %v1914_v38 }
 0xe99   :  { %v1921_v42 = vadd.f32 1e-12, %v1919_v37 }
 0xe9a   :  { %v1920_v43 = vadd.f32 1e-12, %v1918_v40 }
 0xe9b   :  { %5339 = vrsqrt.f32 %v1921_v42 }
 0xe9c   :  { %5341 = vrsqrt.f32 %v1920_v43 }
 0xea5   :  { %v5340_v44 = vpop.eup %5339 }
 0xea6   :  { %v5342_v46 = vpop.eup %5341  ;;  %v1925_v48 = vmul.f32 %v5340_v44, %v1909_v25 }
 0xea7   :  { %v1924_v49 = vmul.f32 %v5342_v46, %v1908_v26 }
 0xea8   :  { %v1933_v51 = vmul.f32 %v4651_v45, %v1925_v48 }
 0xea9   :  { %v1932_v52 = vmul.f32 %v4651_v45, %v1924_v49 }
 0xeaa   :  { %v5801_v55 = vadd.f32 %v4652_v50, %v1933_v51 }
 0xeab   :  { %v5799_v54 = vadd.f32 %v4652_v50, %v1932_v52 }
 0xead   :  { %5005 = vmatprep.mubr.msk.f32.mxu1 %vm70_vm0, %v5799_v54 }
 0xeae   :  { %5006 = vmatmul.mubr.msk.f32.vlgmr.msra.gmra.mrb[20].mxu1 %vm70_vm0, %v5801_v55 }
 0xf81   :  { %v5007_v4 = vpop.f32.mrb[20].mxu1 }
 0xf82   :  { %v2031_v5 = vadd.f32 %v5007_v4, %v4653_v39  ;;  %v2025_v6 = vpop.f32.mrb[21].mxu1 }
 0xf83   :  { %v2026_v41 = vadd.f32 %v4653_v39, %v2025_v6 }
 0xf84   :  { %v2037_v7 = vmul.f32 0.70710677, %v2031_v5  ;;  %v2035_v61 = vmul.f32 0.5, %v2031_v5 }
 0xf85   :  { %v2036_v8 = vmul.f32 0.70710677, %v2026_v41  ;;  %v2034_v59 = vmul.f32 0.5, %v2026_v41 }
 0xf86   :  { %v2039_v9 = vand.u32 2147483647, %v2037_v7  ;;  %vm2079_vm3 = vcmp.lt.f32.partialorder %v2037_v7, 0.0 }
 0xf87   :  { %v2038_v10 = vand.u32 2147483647, %v2036_v8  ;;  %vm2078_vm4 = vcmp.lt.f32.partialorder %v2036_v8, 0.0 }
 0xf88   :  { %v2041_v11 = vmul.f32 0.3275911, %v2039_v9  ;;  %v2067_v16 = vsub.f32 0.0, %v2039_v9 }
 0xf89   :  { %v2040_v12 = vmul.f32 0.3275911, %v2038_v10  ;;  %v2066_v17 = vsub.f32 0.0, %v2038_v10 }
 0xf8a   :  { %v2043_v13 = vadd.f32 1.0, %v2041_v11  ;;  %v2069_v19 = vmul.f32 %v2067_v16, %v2039_v9 }
 0xf8b   :  { %v2042_v15 = vadd.f32 1.0, %v2040_v12  ;;  %v2068_v23 = vmul.f32 %v2066_v17, %v2038_v10  ;;  %v4662_v17 = vld [vmem:[%s6228_s26 + $0x28] sm:$0xff] }
 0xf8c   :  { %5343 = vrcp.f32 %v2043_v13  ;;  %v2072_v26 = vmul.f32 1.442695, %v2069_v19  ;;  %v4663_v19 = vld [vmem:[%s6228_s26 + $0x30] sm:$0xff] }
 0xf8d   :  { %5345 = vrcp.f32 %v2042_v15  ;;  %v2070_v14 = vmul.f32 1.442695, %v2068_v23 }
 0xf8e   :  { %5347 = vpow2.f32 %v2072_v26 }
 0xf8f   :  { %5349 = vpow2.f32 %v2070_v14 }
 0xf96   :  { %v5344_v18 = vpop.eup %5343 }
 0xf97   :  { %v5346_v20 = vpop.eup %5345  ;;  %v2049_v22 = vmul.f32 1.0614054, %v5344_v18 }
 0xf98   :  { %v2048_v24 = vmul.f32 1.0614054, %v5346_v20  ;;  %v5348_v43 = vpop.eup %5347 }
 0xf99   :  { %v2051_v25 = vadd.f32 -1.4531521, %v2049_v22  ;;  %v5350_v45 = vpop.eup %5349 }
 0xf9a   :  { %v2050_v21 = vadd.f32 -1.4531521, %v2048_v24 }
 0xf9b   :  { %v2053_v27 = vmul.f32 %v5344_v18, %v2051_v25 }
 0xf9c   :  { %v2052_v35 = vmul.f32 %v5346_v20, %v2050_v21 }
 0xf9d   :  { %v2055_v33 = vadd.f32 1.4214138, %v2053_v27 }
 0xf9e   :  { %v2054_v28 = vadd.f32 1.4214138, %v2052_v35  ;;  %v4659_v35 = vld [vmem:[%s6200_s14] ss:$0 sm:$0xff] }
 0xf9f   :  { %v2057_v29 = vmul.f32 %v5344_v18, %v2055_v33 }
 0xfa0   :  { %v2056_v30 = vmul.f32 %v5346_v20, %v2054_v28 }
 0xfa1   :  { %v2059_v31 = vadd.f32 -0.28449672, %v2057_v29 }
 0xfa2   :  { %v2058_v32 = vadd.f32 -0.28449672, %v2056_v30  ;;  %v4660_v30 = vld [vmem:[%s6201_s15] ss:$0 sm:$0xff] }
 0xfa3   :  { %v2061_v34 = vmul.f32 %v5344_v18, %v2059_v31 }
 0xfa4   :  { %v2060_v37 = vmul.f32 %v5346_v20, %v2058_v32 }
 0xfa5   :  { %v2063_v38 = vadd.f32 0.2548296, %v2061_v34 }
 0xfa6   :  { %v2062_v40 = vadd.f32 0.2548296, %v2060_v37 }
 0xfa7   :  { %v2065_v42 = vmul.f32 %v5344_v18, %v2063_v38  ;;  %v4666_v38 = vld [vmem:[%s6191_s5 + $0x1] ss:$0 sm:$0xff] }
 0xfa8   :  { %v2064_v44 = vmul.f32 %v5346_v20, %v2062_v40  ;;  %v4664_v20 = vld [vmem:[%s6228_s26 + $0x38] sm:$0xff] }
 0xfa9   :  { %v2075_v46 = vmul.f32 %v5348_v43, %v2065_v42  ;;  %v5233_v22 = vpack.c.bf16 %v4664_v20, %v4663_v19  ;;  %v5943_v19 = vld [vmem:[%s6231_s29 + $0x1] ss:$0 sm:$0xff] }
 0xfaa   :  { %v2074_v48 = vmul.f32 %v5350_v45, %v2064_v44 }
 0xfab   :  { %v2077_v49 = vsub.f32 1.0, %v2075_v46 }
 0xfac   :  { %v2076_v50 = vsub.f32 1.0, %v2074_v48 }
 0xfad   :  { %v2081_v51 = vsub.f32 0.0, %v2077_v49 }
 0xfae   :  { %v2080_v52 = vsub.f32 0.0, %v2076_v50 }
 0xfaf   :  { %v2083_v56 = vsel %vm2079_vm3, %v2081_v51, %v2077_v49 }
 0xfb0   :  { %v2085_v57 = vadd.f32 1.0, %v2083_v56  ;;  %v2082_v58 = vsel %vm2078_vm4, %v2080_v52, %v2076_v50 }
 0xfb1   :  { %v2084_v60 = vadd.f32 1.0, %v2082_v58 }
 0xfb2   :  { %v2087_v63 = vmul.f32 %v2085_v57, %v2035_v61 }
 0xfb3   :  { %v2086_v62 = vmul.f32 %v2084_v60, %v2034_v59 }
 0xfb5   :  { %5024 = vmatprep.mubr.msk.f32.mxu0 %vm2103_vm5, %v2086_v62 }
 0xfb6   :  { %5025 = vmatmul.mubr.msk.f32.vlgmr.msra.gmra.mrb[16].mxu0 %vm2103_vm5, %v2087_v63 }
 0xfb7   :  { %5050 = vmatprep.mubr.msk.f32.mxu0 %vm5432_vm1, %v5431_v36 }
0x1089   :  { %v5026_v1 = vpop.f32.mrb[16].mxu0 }
0x108a   :  { %v2182_v2 = vadd.f32 %v5026_v1, %v4656_v0  ;;  %v2176_v3 = vpop.f32.mrb[17].mxu0 }
0x108b   :  { %v2177_v39 = vadd.f32 %v4656_v0, %v2176_v3 }
0x108c   :  { %v2186_v4 = vadd.f32 %v2182_v2, %v5801_v55 }
0x108d   :  { %v2185_v5 = vadd.f32 %v2177_v39, %v5799_v54  ;;  %v4661_v54 = vld [vmem:[%s6228_s26 + $0x20] sm:$0xff] }
0x108e   :  { %v2192_v6 = vsel %vm70_vm0, %v2186_v4, 0.0  ;;  %v5229_v18 = vpack.c.bf16 %v4662_v17, %v4661_v54 }
0x108f   :  { %2193 = vadd.xlane.f32.xlu1 %v2192_v6  ;;  %v2189_v41 = vsel %vm70_vm0, %v2185_v5, 0.0 }
0x1090   :  { %2190 = vadd.xlane.f32.xlu0 %v2189_v41  ;;  %5230 = vmatprep.subr.bf16.mxu1 %v5229_v18 }
0x1091   :  { %5232 = vmatpush3.bf16.msra.mxu1 %v5229_v18 }
0x1092   :  { %5234 = vmatprep.subr.bf16.mxu1 %v5233_v22 }
0x1095   :  { %5236 = vmatpush3.bf16.msra.mxu1 %v5233_v22 }
0x1096   :  { %5038 = vmatprep.subr.mxu1 %v5431_v36 }
0x111c   :  { %v2194_v7 = vpop.xlane.xlu1 %2193 }
0x111d   :  { %v2196_v8 = vmul.f32 0.03125, %v2194_v7  ;;  %v2191_v9 = vpop.xlane.xlu0 %2190 }
0x111e   :  { %v2195_v10 = vmul.f32 0.03125, %v2191_v9 }
0x111f   :  { %v2198_v11 = vsub.f32 %v2186_v4, %v2196_v8 }
0x1120   :  { %v2197_v12 = vsub.f32 %v2185_v5, %v2195_v10 }
0x1121   :  { %v2200_v13 = vmul.f32 %v2198_v11, %v2198_v11 }
0x1122   :  { %v2199_v15 = vmul.f32 %v2197_v12, %v2197_v12 }
0x1123   :  { %v2204_v16 = vsel %vm70_vm0, %v2200_v13, 0.0 }
0x1124   :  { %2205 = vadd.xlane.f32.xlu1 %v2204_v16  ;;  %v2201_v55 = vsel %vm70_vm0, %v2199_v15, 0.0 }
0x1125   :  { %2202 = vadd.xlane.f32.xlu0 %v2201_v55 }
0x11b1   :  { %v2206_v23 = vpop.xlane.xlu1 %2205 }
0x11b2   :  { %v2208_v24 = vmul.f32 0.03125, %v2206_v23  ;;  %v2203_v25 = vpop.xlane.xlu0 %2202 }
0x11b3   :  { %v2207_v26 = vmul.f32 0.03125, %v2203_v25 }
0x11b4   :  { %v2210_v21 = vadd.f32 1e-12, %v2208_v24 }
0x11b5   :  { %v2209_v27 = vadd.f32 1e-12, %v2207_v26 }
0x11b6   :  { %5351 = vrsqrt.f32 %v2210_v21 }
0x11b7   :  { %5353 = vrsqrt.f32 %v2209_v27 }
0x11c0   :  { %v5352_v14 = vpop.eup %5351 }
0x11c1   :  { %v5354_v33 = vpop.eup %5353  ;;  %v2214_v28 = vmul.f32 %v5352_v14, %v2198_v11 }
0x11c2   :  { %v2213_v29 = vmul.f32 %v5354_v33, %v2197_v12 }
0x11c3   :  { %v2222_v31 = vmul.f32 %v4659_v35, %v2214_v28 }
0x11c4   :  { %v2221_v32 = vmul.f32 %v4659_v35, %v2213_v29 }
0x11c5   :  { %v5869_v37 = vadd.f32 %v4660_v30, %v2222_v31 }
0x11c6   :  { %v5867_v34 = vadd.f32 %v4660_v30, %v2221_v32  ;;  %v5962_v30 = vld [vmem:[%s6231_s29] ss:$0 sm:$0xff]  ;;  %s6234_s29 = smov 48  }
0x11c8   :  { %5035 = vmatprep.mubr.msk.f32.mxu1 %vm70_vm0, %v5867_v34 }
0x11c9   :  { %5036 = vmatmul.mubr.msk.f32.vlgmr.msra.gmra.mrb[22].mxu1 %vm70_vm0, %v5869_v37 }
0x11ca   :  { %5040 = vmatprep.mubr.msk.f32.mxu1 %vm5432_vm1, %v5431_v36 }
0x129c   :  { %v5037_v40 = vpop.f32.mrb[22].mxu1 }
0x129d   :  { %v5880_v42 = vadd.f32 %v5037_v40, %v4666_v38  ;;  %v2316_v43 = vpop.f32.mrb[23].mxu1 }
0x129e   :  { %v5882_v44 = vadd.f32 %v4666_v38, %v2316_v43 }
0x129f   :  { %2408 = vrot.lane.b32.xlu1 %v5880_v42, %s5433_s27 }
0x12a0   :  { %2331 = vrot.lane.b32.xlu0 %v5882_v44, %s5433_s27 }
0x1311   :  { %v2409_v46 = vpop.permute.xlu1 %2408 }
0x1312   :  { %v2332_v45 = vpop.permute.xlu0 %2331 }
0x1313   :  { %5039 = vmatpush3.xpose.msk.msra.mxu1 %vm215_vm2, %v2332_v45 }
0x1314   :  { %5043 = vmatprep.subr.mxu1 %v5431_v36 }
0x1316   :  { %5041 = vmatmul.mubr.msk.f32.vlgmr.msra.gmra.mrb[24].mxu1 %vm215_vm2, %v5882_v44 }
0x1317   :  { %5044 = vmatpush3.xpose.msk.msra.mxu1 %vm215_vm2, %v2409_v46  ;;  %5045 = vmatprep.mubr.msk.f32.mxu1 %vm5432_vm1, %v5431_v36 }
0x1318   :  { %5053 = vmatprep.subr.mxu1 %v5431_v36 }
0x131a   :  { %5046 = vmatmul.mubr.msk.f32.vlgmr.msra.gmra.mrb[26].mxu1 %vm215_vm2, %v5880_v42 }
0x131b   :  { %5055 = vmatprep.mubr.msk.f32.mxu1 %vm5432_vm1, %v5431_v36 }
0x13e9   :  { %v2403_v48 = vpop.f32.mrb[24].mxu1 }
0x13ea   :  { %v5042_v49 = vpop.f32.mrb[25].mxu1  ;;  %v2484_v58 = vmul.f32 0.35355338, %v2403_v48 }
0x13ec   :  { %v2486_v59 = vadd.f32 %v5630_v53, %v2484_v58 }
0x13ed   :  { %v2480_v50 = vpop.f32.mrb[26].mxu1 }
0x13ee   :  { %v2485_v51 = vmul.f32 0.35355338, %v2480_v50  ;;  %v5047_v52 = vpop.f32.mrb[27].mxu1  ;;  %v2488_v60 = vsel %vm215_vm2, %v2486_v59, -inf }
0x13f0   :  { %v2487_v56 = vadd.f32 %v5619_v47, %v2485_v51 }
0x13f2   :  { %v2491_v57 = vsel %vm215_vm2, %v2487_v56, -inf }
0x13f3   :  { %2492 = vmax.xlane.f32.xlu1 %v2491_v57 }
0x1404   :  { %2742 = vrot.lane.b32.xlu1 %v5880_v42, %s5434_s30 }
0x1408   :  { %2740 = vrot.lane.b32.xlu1 %v5880_v42, %s5435_s0 }
0x142c   :  { %2489 = vmax.xlane.f32.xlu1 %v2488_v60 }
0x143d   :  { %2664 = vrot.lane.b32.xlu1 %v5882_v44, %s5434_s30  ;;  %s6232_s30 = smov 56  }
0x1441   :  { %2662 = vrot.lane.b32.xlu1 %v5882_v44, %s5435_s0  ;;  %s6233_s0 = smov 112  }
0x1445   :  { %3160 = vrot.lane.b32.xlu1 %v5882_v44, %s5436_s22 }
0x1480   :  { %v2493_v47 = vpop.xlane.xlu1 %2492 }
0x1481   :  { %v2495_v61 = vsub.f32 %v2487_v56, %v2493_v47 }
0x1483   :  { %v2498_v62 = vmul.f32 1.442695, %v2495_v61 }
0x1484   :  { %v2743_v53 = vpop.permute.xlu1 %2742 }
0x1485   :  { %5355 = vpow2.f32 %v2498_v62 }
0x1488   :  { %v2741_v1 = vpop.permute.xlu1 %2740 }
0x148f   :  { %v5356_v63 = vpop.eup %5355 }
0x1490   :  { %v2503_v0 = vsel %vm215_vm2, %v5356_v63, 0.0 }
0x1491   :  { %2504 = vadd.xlane.f32.xlu0 %v2503_v0 }
0x14a7   :  { %2586 = vrot.lane.b32.xlu0 %v5880_v42, %s5437_s23 }
0x14b9   :  { %v2490_v2 = vpop.xlane.xlu1 %2489 }
0x14ba   :  { %v2494_v3 = vsub.f32 %v2486_v59, %v2490_v2 }
0x14bc   :  { %v2496_v39 = vmul.f32 1.442695, %v2494_v3 }
0x14bd   :  { %v2665_v12 = vpop.permute.xlu1 %2664 }
0x14be   :  { %5357 = vpow2.f32 %v2496_v39 }
0x14c1   :  { %v2663_v15 = vpop.permute.xlu1 %2662 }
0x14c5   :  { %v3161_v38 = vpop.permute.xlu1 %3160 }
0x14c8   :  { %v5358_v4 = vpop.eup %5357 }
0x14c9   :  { %v2500_v5 = vsel %vm215_vm2, %v5358_v4, 0.0 }
0x14ca   :  { %2501 = vadd.xlane.f32.xlu0 %v2500_v5 }
0x14e0   :  { %2510 = vrot.lane.b32.xlu0 %v5882_v44, %s5437_s23 }
0x151e   :  { %v2505_v6 = vpop.xlane.xlu0 %2504 }
0x151f   :  { %5359 = vrcp.f32 %v2505_v6 }
0x1522   :  { %v2587_v41 = vpop.permute.xlu0 %2586 }
0x1523   :  { %5054 = vmatpush3.msra.mxu1 %v2587_v41 }
0x1524   :  { %5063 = vmatprep.subr.mxu1 %v5431_v36 }
0x1529   :  { %v5360_v7 = vpop.eup %5359 }
0x152a   :  { %v2509_v8 = vmul.f32 %v5360_v7, %v5356_v63  ;;  %v4670_v7 = vld [vmem:[%s6192_s6 + $0x28] sm:$0xff] }
0x152c   :  { %5056 = vmatmul.mubr.msk.f32.vlgmr.msra.gmra.mrb[28].mxu1 %vm215_vm2, %v2509_v8  ;;  %v4669_v8 = vld [vmem:[%s6192_s6 + $0x20] sm:$0xff] }
0x152d   :  { %5064 = vmatpush3.xpose.msk.msra.mxu1 %vm215_vm2, %v2743_v53  ;;  %5065 = vmatprep.mubr.msk.f32.mxu1 %vm5432_vm1, %v5431_v36 }
0x152e   :  { %5073 = vmatprep.subr.mxu1 %v5431_v36 }
0x1530   :  { %5066 = vmatmul.mubr.msk.f32.vlgmr.msra.gmra.mrb[30].mxu1 %vm215_vm2, %v2741_v1 }
0x1531   :  { %5075 = vmatprep.mubr.msk.f32.mxu1 %vm5432_vm1, %v5431_v36 }
0x1557   :  { %v2502_v9 = vpop.xlane.xlu0 %2501 }
0x1558   :  { %5361 = vrcp.f32 %v2502_v9 }
0x155b   :  { %v2511_v10 = vpop.permute.xlu0 %2510 }
0x155c   :  { %5049 = vmatpush3.msra.mxu0 %v2511_v10 }
0x155d   :  { %5058 = vmatprep.subr.mxu0 %v5431_v36 }
0x1562   :  { %v5362_v11 = vpop.eup %5361 }
0x1563   :  { %v2507_v13 = vmul.f32 %v5362_v11, %v5358_v4 }
0x1565   :  { %5051 = vmatmul.mubr.msk.f32.vlgmr.msra.gmra.mrb[18].mxu0 %vm215_vm2, %v2507_v13 }
0x1566   :  { %5059 = vmatpush3.xpose.msk.msra.mxu0 %vm215_vm2, %v2665_v12  ;;  %5060 = vmatprep.mubr.msk.f32.mxu0 %vm5432_vm1, %v5431_v36 }
0x1567   :  { %5068 = vmatprep.subr.mxu0 %v5431_v36 }
0x1569   :  { %5061 = vmatmul.mubr.msk.f32.vlgmr.msra.gmra.mrb[20].mxu0 %vm215_vm2, %v2663_v15 }
0x156a   :  { %5070 = vmatprep.mubr.msk.f32.mxu0 %vm5432_vm1, %v5431_v36 }
0x15ff   :  { %v5938_v16 = vpop.f32.mrb[28].mxu1 }
0x1600   :  { %v5057_v55 = vpop.f32.mrb[29].mxu1 }
0x1603   :  { %v2814_v54 = vpop.f32.mrb[30].mxu1 }
0x1604   :  { %v2819_v17 = vmul.f32 0.35355338, %v2814_v54  ;;  %v5067_v18 = vpop.f32.mrb[31].mxu1 }
0x1606   :  { %v2821_v20 = vadd.f32 %v5943_v19, %v2819_v17 }
0x1608   :  { %v2825_v22 = vsel %vm215_vm2, %v2821_v20, -inf }
0x1609   :  { %2826 = vmax.xlane.f32.xlu0 %v2825_v22 }
0x161f   :  { %2920 = vrot.lane.b32.xlu0 %v5880_v42, %s6232_s30 }
0x1623   :  { %3158 = vrot.lane.b32.xlu0 %v5882_v44, %s6233_s0 }
0x1627   :  { %3236 = vrot.lane.b32.xlu0 %v5880_v42, %s6233_s0 }
0x1638   :  { %v5953_v23 = vpop.f32.mrb[18].mxu0 }
0x1639   :  { %v5052_v24 = vpop.f32.mrb[19].mxu0 }
0x163c   :  { %v2736_v25 = vpop.f32.mrb[20].mxu0 }
0x163d   :  { %v5062_v26 = vpop.f32.mrb[21].mxu0  ;;  %v2818_v29 = vmul.f32 0.35355338, %v2736_v25 }
0x163e   :  { %v4671_v26 = vld [vmem:[%s6192_s6 + $0x30] sm:$0xff] }
0x163f   :  { %v2820_v31 = vadd.f32 %v5962_v30, %v2818_v29 }
0x1641   :  { %v2822_v32 = vsel %vm215_vm2, %v2820_v31, -inf }
0x1696   :  { %v2827_v21 = vpop.xlane.xlu0 %2826 }
0x1697   :  { %v2829_v27 = vsub.f32 %v2821_v20, %v2827_v21 }
0x1699   :  { %v2832_v14 = vmul.f32 1.442695, %v2829_v27 }
0x169a   :  { %v2921_v35 = vpop.permute.xlu0 %2920 }
0x169b   :  { %5363 = vpow2.f32 %v2832_v14  ;;  %5074 = vmatpush3.msra.mxu1 %v2921_v35 }
0x169c   :  { %5088 = vmatprep.subr.mxu1 %v5431_v36 }
0x169e   :  { %v3159_v46 = vpop.permute.xlu0 %3158 }
0x16a2   :  { %v3237_v49 = vpop.permute.xlu0 %3236 }
0x16a5   :  { %v5364_v33 = vpop.eup %5363 }
0x16a6   :  { %v2837_v28 = vsel %vm215_vm2, %v5364_v33, 0.0 }
0x16a7   :  { %2838 = vadd.xlane.f32.xlu1 %v2837_v28 }
0x16b8   :  { %3238 = vrot.lane.b32.xlu1 %v5880_v42, %s5436_s22  ;;  %s6235_s22 = smov 72  }
0x16dc   :  { %2823 = vmax.xlane.f32.xlu1 %v2822_v32 }
0x1734   :  { %v2839_v40 = vpop.xlane.xlu1 %2838 }
0x1735   :  { %5365 = vrcp.f32 %v2839_v40 }
0x1738   :  { %v3239_v48 = vpop.permute.xlu1 %3238 }
0x173f   :  { %v5366_v43 = vpop.eup %5365 }
0x1740   :  { %v2843_v45 = vmul.f32 %v5366_v43, %v5364_v33 }
0x1742   :  { %5076 = vmatmul.mubr.msk.f32.vlgmr.msra.gmra.mrb[32].mxu1 %vm215_vm2, %v2843_v45 }
0x1743   :  { %5089 = vmatpush3.xpose.msk.msra.mxu1 %vm215_vm2, %v3161_v38  ;;  %5090 = vmatprep.mubr.msk.f32.mxu1 %vm5432_vm1, %v5431_v36 }
0x1744   :  { %5093 = vmatprep.subr.mxu1 %v5431_v36 }
0x1746   :  { %5091 = vmatmul.mubr.msk.f32.vlgmr.msra.gmra.mrb[34].mxu1 %vm215_vm2, %v3159_v46 }
0x1747   :  { %5094 = vmatpush3.xpose.msk.msra.mxu1 %vm215_vm2, %v3239_v48  ;;  %5095 = vmatprep.mubr.msk.f32.mxu1 %vm5432_vm1, %v5431_v36 }
0x1748   :  { %5103 = vmatprep.subr.mxu1 %v5431_v36 }
0x174a   :  { %5096 = vmatmul.mubr.msk.f32.vlgmr.msra.gmra.mrb[36].mxu1 %vm215_vm2, %v3237_v49 }
0x174b   :  { %5105 = vmatprep.mubr.msk.f32.mxu1 %vm5432_vm1, %v5431_v36 }
0x1769   :  { %v2824_v50 = vpop.xlane.xlu1 %2823 }
0x176a   :  { %v2828_v51 = vsub.f32 %v2820_v31, %v2824_v50 }
0x176c   :  { %v2830_v52 = vmul.f32 1.442695, %v2828_v51 }
0x176e   :  { %5367 = vpow2.f32 %v2830_v52 }
0x1778   :  { %v5368_v56 = vpop.eup %5367 }
0x1779   :  { %v2834_v57 = vsel %vm215_vm2, %v5368_v56, 0.0 }
0x177a   :  { %2835 = vadd.xlane.f32.xlu0 %v2834_v57 }
0x1790   :  { %2844 = vrot.lane.b32.xlu0 %v5882_v44, %s6232_s30 }
0x1794   :  { %3416 = vrot.lane.b32.xlu0 %v5880_v42, %s6234_s29 }
0x1798   :  { %3577 = vrot.lane.b32.xlu0 %v5882_v44, %s6235_s22 }
0x179c   :  { %3655 = vrot.lane.b32.xlu0 %v5880_v42, %s6235_s22 }
0x17a0   :  { %3575 = vrot.lane.b32.xlu0 %v5882_v44, %s6236_s3 }
0x1807   :  { %v2836_v58 = vpop.xlane.xlu0 %2835 }
0x1808   :  { %5369 = vrcp.f32 %v2836_v58 }
0x180b   :  { %v2845_v59 = vpop.permute.xlu0 %2844 }
0x180c   :  { %5069 = vmatpush3.msra.mxu0 %v2845_v59 }
0x180d   :  { %5078 = vmatprep.subr.mxu0 %v4670_v7 }
0x180f   :  { %v3417_v60 = vpop.permute.xlu0 %3416 }
0x1810   :  { %5104 = vmatpush3.msra.mxu1 %v3417_v60 }
0x1811   :  { %5113 = vmatprep.subr.mxu1 %v5431_v36 }
0x1812   :  { %v5370_v47 = vpop.eup %5369 }
0x1813   :  { %v2841_v61 = vmul.f32 %v5370_v47, %v5368_v56  ;;  %v3578_v27 = vpop.permute.xlu0 %3577 }
0x1815   :  { %5071 = vmatmul.mubr.msk.f32.vlgmr.msra.gmra.mrb[22].mxu0 %vm215_vm2, %v2841_v61  ;;  %v2992_v62 = vpop.f32.mrb[32].mxu1 }
0x1816   :  { %v5077_v63 = vpop.f32.mrb[33].mxu1  ;;  %5079 = vmatpush3.msra.mxu0 %v4670_v7 }
0x1817   :  { %5083 = vmatprep.subr.mxu0 %v4669_v8  ;;  %v3656_v35 = vpop.permute.xlu0 %3655 }
0x1819   :  { %v3232_v0 = vpop.f32.mrb[34].mxu1 }
0x181a   :  { %v3314_v53 = vmul.f32 0.35355338, %v3232_v0  ;;  %v5092_v1 = vpop.f32.mrb[35].mxu1 }
0x181b   :  { %v3576_v28 = vpop.permute.xlu0 %3575 }
0x181c   :  { %v3316_v2 = vadd.f32 %v5962_v30, %v3314_v53 }
0x181d   :  { %v3310_v3 = vpop.f32.mrb[36].mxu1 }
0x181e   :  { %v3315_v39 = vmul.f32 0.35355338, %v3310_v3  ;;  %v5097_v4 = vpop.f32.mrb[37].mxu1  ;;  %v3318_v5 = vsel %vm215_vm2, %v3316_v2, -inf }
0x181f   :  { %3319 = vmax.xlane.f32.xlu1 %v3318_v5 }
0x1820   :  { %v3317_v6 = vadd.f32 %v5943_v19, %v3315_v39 }
0x1822   :  { %v3321_v41 = vsel %vm215_vm2, %v3317_v6, -inf }
0x1823   :  { %3322 = vmax.xlane.f32.xlu1 %v3321_v41 }
0x18ac   :  { %v3320_v9 = vpop.xlane.xlu1 %3319 }
0x18ad   :  { %v3324_v10 = vsub.f32 %v3316_v2, %v3320_v9  ;;  %v4706_v9 = vld [vmem:[%s6193_s7 + $0x1] ss:$0 sm:$0xff] }
0x18af   :  { %v3326_v11 = vmul.f32 1.442695, %v3324_v10 }
0x18b0   :  { %v3323_v12 = vpop.xlane.xlu1 %3322 }
0x18b1   :  { %5371 = vpow2.f32 %v3326_v11  ;;  %v3325_v13 = vsub.f32 %v3317_v6, %v3323_v12  ;;  %v4672_v6 = vld [vmem:[%s6192_s6 + $0x38] sm:$0xff] }
0x18b3   :  { %v3328_v15 = vmul.f32 1.442695, %v3325_v13 }
0x18b5   :  { %5373 = vpow2.f32 %v3328_v15 }
0x18bb   :  { %v5372_v55 = vpop.eup %5371 }
0x18bc   :  { %v3330_v54 = vsel %vm215_vm2, %v5372_v55, 0.0 }
0x18bd   :  { %3331 = vadd.xlane.f32.xlu1 %v3330_v54 }
0x18bf   :  { %v5374_v17 = vpop.eup %5373 }
0x18c0   :  { %v3333_v18 = vsel %vm215_vm2, %v5374_v17, 0.0 }
0x18c1   :  { %3334 = vadd.xlane.f32.xlu1 %v3333_v18 }
0x18d2   :  { %3340 = vrot.lane.b32.xlu1 %v5882_v44, %s6234_s29 }
0x18d6   :  { %3653 = vrot.lane.b32.xlu1 %v5880_v42, %s6236_s3 }
0x18e8   :  { %v2916_v20 = vpop.f32.mrb[22].mxu0 }
0x18e9   :  { %v5072_v22 = vpop.f32.mrb[23].mxu0  ;;  %5080 = vmatprep.mubr.msk.f32.mxu0 %vm215_vm2, %v2916_v20 }
0x18ea   :  { %5081 = vmatmul.mubr.msk.f32.vlgmr.msra.gmra.mrb[24].mxu0 %vm215_vm2, %v2992_v62 }
0x18eb   :  { %5085 = vmatprep.mubr.msk.f32.mxu0 %vm215_vm2, %v5953_v23  ;;  %5084 = vmatpush3.msra.mxu0 %v4669_v8 }
0x18ec   :  { %5098 = vmatprep.subr.mxu0 %v5431_v36 }
0x18f2   :  { %5086 = vmatmul.mubr.msk.f32.vlgmr.msra.gmra.mrb[24].mxu0 %vm215_vm2, %v5938_v16 }
0x18f3   :  { %5100 = vmatprep.mubr.msk.f32.mxu0 %vm5432_vm1, %v5431_v36 }
0x194a   :  { %v3332_v24 = vpop.xlane.xlu1 %3331 }
0x194b   :  { %5375 = vrcp.f32 %v3332_v24 }
0x194e   :  { %v3335_v25 = vpop.xlane.xlu1 %3334 }
0x194f   :  { %5377 = vrcp.f32 %v3335_v25 }
0x1952   :  { %v3341_v21 = vpop.permute.xlu1 %3340 }
0x1953   :  { %5099 = vmatpush3.msra.mxu0 %v3341_v21 }
0x1954   :  { %5108 = vmatprep.subr.mxu0 %v4671_v26 }
0x1955   :  { %v5376_v23 = vpop.eup %5375 }
0x1956   :  { %v3337_v14 = vmul.f32 %v5376_v23, %v5372_v55  ;;  %v3654_v40 = vpop.permute.xlu1 %3653 }
0x1958   :  { %5101 = vmatmul.mubr.msk.f32.vlgmr.msra.gmra.mrb[26].mxu0 %vm215_vm2, %v3337_v14  ;;  %v4712_v14 = vld [vmem:[%s6196_s10 + $0x28] sm:$0xff] }
0x1959   :  { %v5378_v16 = vpop.eup %5377  ;;  %5109 = vmatpush3.msra.mxu0 %v4671_v26 }
0x195a   :  { %v3339_v33 = vmul.f32 %v5378_v16, %v5374_v17  ;;  %5118 = vmatprep.subr.mxu0 %v5431_v36 }
0x195c   :  { %5106 = vmatmul.mubr.msk.f32.vlgmr.msra.gmra.mrb[38].mxu1 %vm215_vm2, %v3339_v33  ;;  %v4714_v33 = vld [vmem:[%s6196_s10 + $0x38] sm:$0xff] }
0x195d   :  { %5114 = vmatpush3.xpose.msk.msra.mxu1 %vm215_vm2, %v3578_v27  ;;  %5115 = vmatprep.mubr.msk.f32.mxu1 %vm5432_vm1, %v5431_v36 }
0x195e   :  { %5123 = vmatprep.subr.mxu1 %v5431_v36 }
0x1960   :  { %5116 = vmatmul.mubr.msk.f32.vlgmr.msra.gmra.mrb[40].mxu1 %vm215_vm2, %v3576_v28 }
0x1961   :  { %5125 = vmatprep.mubr.msk.f32.mxu1 %vm5432_vm1, %v5431_v36 }
0x1a2b   :  { %v3412_v29 = vpop.f32.mrb[26].mxu0 }
0x1a2c   :  { %v5102_v31 = vpop.f32.mrb[27].mxu0  ;;  %5110 = vmatprep.mubr.msk.f32.mxu0 %vm215_vm2, %v3412_v29 }
0x1a2f   :  { %v3488_v32 = vpop.f32.mrb[38].mxu1 }
0x1a30   :  { %v5107_v38 = vpop.f32.mrb[39].mxu1  ;;  %5111 = vmatmul.mubr.msk.f32.vlgmr.msra.gmra.mrb[24].mxu0 %vm215_vm2, %v3488_v32 }
0x1a31   :  { %5119 = vmatpush3.xpose.msk.msra.mxu0 %vm215_vm2, %v3656_v35  ;;  %5120 = vmatprep.mubr.msk.f32.mxu0 %vm5432_vm1, %v5431_v36  ;;  %v4713_v35 = vld [vmem:[%s6196_s10 + $0x30] sm:$0xff] }
0x1a32   :  { %5128 = vmatprep.subr.mxu0 %v5431_v36  ;;  %v5241_v28 = vpack.c.bf16 %v4714_v33, %v4713_v35 }
0x1a33   :  { %v3649_v43 = vpop.f32.mrb[40].mxu1 }
0x1a34   :  { %v3731_v45 = vmul.f32 0.35355338, %v3649_v43  ;;  %v5117_v46 = vpop.f32.mrb[41].mxu1  ;;  %5121 = vmatmul.mubr.msk.f32.vlgmr.msra.gmra.mrb[28].mxu0 %vm215_vm2, %v3654_v40 }
0x1a35   :  { %5130 = vmatprep.mubr.msk.f32.mxu0 %vm5432_vm1, %v5431_v36  ;;  %v4709_v46 = vld [vmem:[%s6194_s8 + $0x1] ss:$0 sm:$0xff] }
0x1a36   :  { %v3733_v48 = vadd.f32 %v5962_v30, %v3731_v45 }
0x1a38   :  { %v3735_v49 = vsel %vm215_vm2, %v3733_v48, -inf }
0x1a39   :  { %3736 = vmax.xlane.f32.xlu0 %v3735_v49 }
0x1ac6   :  { %v3737_v50 = vpop.xlane.xlu0 %3736 }
0x1ac7   :  { %v3741_v51 = vsub.f32 %v3733_v48, %v3737_v50 }
0x1ac9   :  { %v3743_v52 = vmul.f32 1.442695, %v3741_v51  ;;  %v4710_v51 = vld [vmem:[%s6195_s9 + $0x1] ss:$0 sm:$0xff] }
0x1acb   :  { %5379 = vpow2.f32 %v3743_v52 }
0x1ad5   :  { %v5380_v56 = vpop.eup %5379 }
0x1ad6   :  { %v3747_v57 = vsel %vm215_vm2, %v5380_v56, 0.0 }
0x1ad7   :  { %3748 = vadd.xlane.f32.xlu0 %v3747_v57 }
0x1b07   :  { %v3727_v58 = vpop.f32.mrb[28].mxu0 }
0x1b08   :  { %v3732_v59 = vmul.f32 0.35355338, %v3727_v58  ;;  %v5122_v60 = vpop.f32.mrb[29].mxu0 }
0x1b09   :  { %v4720_v60 = vld [vmem:[%s6198_s12 + $0x48] sm:$0xff] }
0x1b0a   :  { %v3734_v47 = vadd.f32 %v5943_v19, %v3732_v59  ;;  %v4719_v59 = vld [vmem:[%s6198_s12 + $0x40] sm:$0xff] }
0x1b0c   :  { %v3738_v61 = vsel %vm215_vm2, %v3734_v47, -inf }
0x1b0d   :  { %3739 = vmax.xlane.f32.xlu1 %v3738_v61  ;;  %v4721_v61 = vld [vmem:[%s6198_s12 + $0x50] sm:$0xff] }
0x1b1e   :  { %3833 = vrot.lane.b32.xlu1 %v5880_v42, %s6237_s21 }
0x1b64   :  { %v3749_v19 = vpop.xlane.xlu0 %3748 }
0x1b9a   :  { %v3740_v30 = vpop.xlane.xlu1 %3739 }
0x1b9b   :  { %v3742_v62 = vsub.f32 %v3734_v47, %v3740_v30  ;;  %v5245_v47 = vpack.c.bf16 %v4720_v60, %v4719_v59  ;;  %v4722_v30 = vld [vmem:[%s6198_s12 + $0x58] sm:$0xff] }
0x1b9d   :  { %v3745_v63 = vmul.f32 1.442695, %v3742_v62  ;;  %v5249_v62 = vpack.c.bf16 %v4722_v30, %v4721_v61 }
0x1b9e   :  { %v3834_v0 = vpop.permute.xlu1 %3833 }
0x1b9f   :  { %5381 = vpow2.f32 %v3745_v63  ;;  %5129 = vmatpush3.msra.mxu0 %v3834_v0  ;;  %v4723_v63 = vld [vmem:[%s6198_s12 + $0x60] sm:$0xff]  ;;  %v4724_v0 = vld [vmem:[%s6198_s12 + $0x68] sm:$0xff] }
0x1ba0   :  { %5383 = vrcp.f32 %v3749_v19  ;;  %5133 = vmatprep.subr.mxu0 %v4672_v6  ;;  %v4726_v19 = vld [vmem:[%s6198_s12 + $0x78] sm:$0xff] }
0x1ba9   :  { %v5382_v53 = vpop.eup %5381 }
0x1baa   :  { %v3750_v1 = vsel %vm215_vm2, %v5382_v53, 0.0  ;;  %v5384_v3 = vpop.eup %5383 }
0x1bab   :  { %3751 = vadd.xlane.f32.xlu0 %v3750_v1  ;;  %v3754_v39 = vmul.f32 %v5384_v3, %v5380_v56  ;;  %v4725_v1 = vld [vmem:[%s6198_s12 + $0x70] sm:$0xff]  ;;  %v4716_v3 = vld [vmem:[%s6197_s11 + $0x1] ss:$0 sm:$0xff] }
0x1bc1   :  { %3757 = vrot.lane.b32.xlu0 %v5882_v44, %s6237_s21 }
0x1c38   :  { %v3752_v2 = vpop.xlane.xlu0 %3751 }
0x1c39   :  { %5385 = vrcp.f32 %v3752_v2  ;;  %v5257_v2 = vpack.c.bf16 %v4726_v19, %v4725_v1 }
0x1c3c   :  { %v3758_v42 = vpop.permute.xlu0 %3757 }
0x1c3d   :  { %5124 = vmatpush3.msra.mxu1 %v3758_v42 }
0x1c3e   :  { %5126 = vmatmul.mubr.msk.f32.vlgmr.msra.gmra.mrb[42].mxu1 %vm215_vm2, %v3754_v39 }
0x1c43   :  { %v5386_v4 = vpop.eup %5385 }
0x1c44   :  { %v3756_v5 = vmul.f32 %v5386_v4, %v5382_v53  ;;  %v5253_v53 = vpack.c.bf16 %v4724_v0, %v4723_v63  ;;  %v4728_v63 = vld [vmem:[%s6199_s13 + $0x1] ss:$0 sm:$0xff] }
0x1c46   :  { %5131 = vmatmul.mubr.msk.f32.vlgmr.msra.gmra.mrb[30].mxu0 %vm215_vm2, %v3756_v5 }
0x1c47   :  { %5134 = vmatpush3.msra.mxu0 %v4672_v6 }
0x1c48   :  { %5246 = vmatprep.subr.bf16.mxu0 %v5245_v47 }
0x1d11   :  { %v3829_v44 = vpop.f32.mrb[42].mxu1 }
0x1d12   :  { %v5127_v41 = vpop.f32.mrb[43].mxu1  ;;  %5135 = vmatprep.mubr.msk.f32.mxu0 %vm215_vm2, %v3829_v44 }
0x1d19   :  { %v3905_v7 = vpop.f32.mrb[30].mxu0 }
0x1d1a   :  { %v5132_v8 = vpop.f32.mrb[31].mxu0  ;;  %5136 = vmatmul.mubr.msk.f32.vlgmr.msra.gmra.mrb[24].mxu0 %vm215_vm2, %v3905_v7 }
0x1d1b   :  { %5248 = vmatpush3.bf16.msra.mxu0 %v5245_v47 }
0x1d1c   :  { %5250 = vmatprep.subr.bf16.mxu0 %v5249_v62 }
0x1d1f   :  { %5252 = vmatpush3.bf16.msra.mxu0 %v5249_v62 }
0x1d20   :  { %5254 = vmatprep.subr.bf16.mxu0 %v5253_v53 }
0x1d23   :  { %5256 = vmatpush3.bf16.msra.mxu0 %v5253_v53 }
0x1d24   :  { %5258 = vmatprep.subr.bf16.mxu0 %v5257_v2 }
0x1d27   :  { %5260 = vmatpush3.bf16.msra.mxu0 %v5257_v2 }
0x1ded   :  { %v5137_v10 = vpop.f32.mrb[24].mxu0 }
0x1dee   :  { %v4001_v11 = vadd.f32 %v5137_v10, %v4706_v9  ;;  %v3981_v12 = vpop.f32.mrb[25].mxu0 }
0x1def   :  { %v4000_v13 = vadd.f32 %v4706_v9, %v3981_v12 }
0x1df0   :  { %v4003_v15 = vadd.f32 %v4001_v11, %v5869_v37 }
0x1df1   :  { %v4002_v55 = vadd.f32 %v4000_v13, %v5867_v34  ;;  %v4711_v34 = vld [vmem:[%s6196_s10 + $0x20] sm:$0xff] }
0x1df2   :  { %v4011_v54 = vsel %vm70_vm0, %v4003_v15, 0.0  ;;  %v5237_v16 = vpack.c.bf16 %v4712_v14, %v4711_v34 }
0x1df3   :  { %4012 = vadd.xlane.f32.xlu0 %v4011_v54  ;;  %v4008_v17 = vsel %vm70_vm0, %v4002_v55, 0.0 }
0x1df4   :  { %4009 = vadd.xlane.f32.xlu1 %v4008_v17  ;;  %5238 = vmatprep.subr.bf16.mxu1 %v5237_v16 }
0x1df5   :  { %5240 = vmatpush3.bf16.msra.mxu1 %v5237_v16 }
0x1df6   :  { %5242 = vmatprep.subr.bf16.mxu1 %v5241_v28 }
0x1df9   :  { %5244 = vmatpush3.bf16.msra.mxu1 %v5241_v28 }
0x1e80   :  { %v4013_v18 = vpop.xlane.xlu0 %4012 }
0x1e81   :  { %v4015_v20 = vmul.f32 0.03125, %v4013_v18  ;;  %v4010_v22 = vpop.xlane.xlu1 %4009 }
0x1e82   :  { %v4014_v24 = vmul.f32 0.03125, %v4010_v22 }
0x1e83   :  { %v4017_v25 = vsub.f32 %v4003_v15, %v4015_v20 }
0x1e84   :  { %v4016_v26 = vsub.f32 %v4002_v55, %v4014_v24 }
0x1e85   :  { %v4019_v21 = vmul.f32 %v4017_v25, %v4017_v25 }
0x1e86   :  { %v4018_v27 = vmul.f32 %v4016_v26, %v4016_v26 }
0x1e87   :  { %v4023_v23 = vsel %vm70_vm0, %v4019_v21, 0.0 }
0x1e88   :  { %4024 = vadd.xlane.f32.xlu1 %v4023_v23  ;;  %v4020_v37 = vsel %vm70_vm0, %v4018_v27, 0.0 }
0x1e89   :  { %4021 = vadd.xlane.f32.xlu0 %v4020_v37 }
0x1f15   :  { %v4025_v29 = vpop.xlane.xlu1 %4024 }
0x1f16   :  { %v4027_v31 = vmul.f32 0.03125, %v4025_v29  ;;  %v4022_v32 = vpop.xlane.xlu0 %4021 }
0x1f17   :  { %v4026_v38 = vmul.f32 0.03125, %v4022_v32 }
0x1f18   :  { %v4029_v40 = vadd.f32 1e-12, %v4027_v31 }
0x1f19   :  { %v4028_v43 = vadd.f32 1e-12, %v4026_v38 }
0x1f1a   :  { %5387 = vrsqrt.f32 %v4029_v40 }
0x1f1b   :  { %5389 = vrsqrt.f32 %v4028_v43 }
0x1f24   :  { %v5388_v45 = vpop.eup %5387 }
0x1f25   :  { %v5390_v48 = vpop.eup %5389  ;;  %v4033_v49 = vmul.f32 %v5388_v45, %v4017_v25 }
0x1f26   :  { %v4032_v50 = vmul.f32 %v5390_v48, %v4016_v26 }
0x1f27   :  { %v4041_v52 = vmul.f32 %v4709_v46, %v4033_v49 }
0x1f28   :  { %v4040_v56 = vmul.f32 %v4709_v46, %v4032_v50 }
0x1f29   :  { %v6085_v58 = vadd.f32 %v4710_v51, %v4041_v52 }
0x1f2a   :  { %v6083_v57 = vadd.f32 %v4710_v51, %v4040_v56 }
0x1f2c   :  { %5146 = vmatprep.mubr.msk.f32.mxu1 %vm70_vm0, %v6083_v57 }
0x1f2d   :  { %5147 = vmatmul.mubr.msk.f32.vlgmr.msra.gmra.mrb[44].mxu1 %vm70_vm0, %v6085_v58 }
0x1f2e   :  { %5172 = vmatprep.mubr.msk.f32.mxu1 %vm5432_vm1, %v5431_v36 }
0x2000   :  { %v5148_v39 = vpop.f32.mrb[44].mxu1 }
0x2001   :  { %v4141_v42 = vadd.f32 %v5148_v39, %v4716_v3  ;;  %v4135_v4 = vpop.f32.mrb[45].mxu1 }
0x2002   :  { %v4136_v5 = vadd.f32 %v4716_v3, %v4135_v4 }
0x2003   :  { %v4147_v6 = vmul.f32 0.70710677, %v4141_v42  ;;  %v4145_v61 = vmul.f32 0.5, %v4141_v42 }
0x2004   :  { %v4146_v44 = vmul.f32 0.70710677, %v4136_v5  ;;  %v4144_v60 = vmul.f32 0.5, %v4136_v5 }
0x2005   :  { %v4149_v41 = vand.u32 2147483647, %v4147_v6  ;;  %vm4189_vm6 = vcmp.lt.f32.partialorder %v4147_v6, 0.0 }
0x2006   :  { %v4148_v7 = vand.u32 2147483647, %v4146_v44  ;;  %vm4188_vm7 = vcmp.lt.f32.partialorder %v4146_v44, 0.0 }
0x2007   :  { %v4151_v8 = vmul.f32 0.3275911, %v4149_v41  ;;  %v4177_v12 = vsub.f32 0.0, %v4149_v41 }
0x2008   :  { %v4150_v9 = vmul.f32 0.3275911, %v4148_v7  ;;  %v4176_v13 = vsub.f32 0.0, %v4148_v7 }
0x2009   :  { %v4153_v10 = vadd.f32 1.0, %v4151_v8  ;;  %v4179_v55 = vmul.f32 %v4177_v12, %v4149_v41 }
0x200a   :  { %v4152_v11 = vadd.f32 1.0, %v4150_v9  ;;  %v4178_v18 = vmul.f32 %v4176_v13, %v4148_v7 }
0x200b   :  { %5391 = vrcp.f32 %v4153_v10  ;;  %v4182_v24 = vmul.f32 1.442695, %v4179_v55 }
0x200c   :  { %5393 = vrcp.f32 %v4152_v11  ;;  %v4180_v21 = vmul.f32 1.442695, %v4178_v18 }
0x200d   :  { %5395 = vpow2.f32 %v4182_v24 }
0x200e   :  { %5397 = vpow2.f32 %v4180_v21  ;;  %v4734_v21 = vld [vmem:[%s6201_s15 + $0x1] ss:$0 sm:$0xff] }
0x2015   :  { %v5392_v15 = vpop.eup %5391 }
0x2016   :  { %v5394_v54 = vpop.eup %5393  ;;  %v4159_v17 = vmul.f32 1.0614054, %v5392_v15 }
0x2017   :  { %v4158_v20 = vmul.f32 1.0614054, %v5394_v54  ;;  %v5396_v38 = vpop.eup %5395 }
0x2018   :  { %v4161_v22 = vadd.f32 -1.4531521, %v4159_v17  ;;  %v5398_v43 = vpop.eup %5397  ;;  %v4344_v17 = vlaneseq }
0x2019   :  { %v4160_v25 = vadd.f32 -1.4531521, %v4158_v20 }
0x201a   :  { %v4163_v26 = vmul.f32 %v5392_v15, %v4161_v22  ;;  %v4347_v18 = vshrl.u32 %v4344_v17, 7  ;;  %v4733_v22 = vld [vmem:[%s6200_s14 + $0x1] ss:$0 sm:$0xff] }
0x201b   :  { %v4162_v27 = vmul.f32 %v5394_v54, %v4160_v25 }
0x201c   :  { %v4165_v23 = vadd.f32 1.4214138, %v4163_v26 }
0x201d   :  { %v4164_v37 = vadd.f32 1.4214138, %v4162_v27 }
0x201e   :  { %v4167_v34 = vmul.f32 %v5392_v15, %v4165_v23  ;;  %v4345_v23 = vand.u32 127, %v4344_v17 }
0x201f   :  { %v4166_v14 = vmul.f32 %v5394_v54, %v4164_v37  ;;  %v4348_v37 = vmul.u32 8, %v4347_v18 }
0x2020   :  { %v4169_v16 = vadd.f32 -0.28449672, %v4167_v34 }
0x2021   :  { %v4168_v35 = vadd.f32 -0.28449672, %v4166_v14  ;;  %vm4349_vm8 = vcmp.eq.s32.totalorder %v4345_v23, %v4348_v37 }
0x2022   :  { %v4171_v33 = vmul.f32 %v5392_v15, %v4169_v16 }
0x2023   :  { %v4170_v28 = vmul.f32 %v5394_v54, %v4168_v35  ;;  %v4426_v35 = vld [vmem:[%s6202_s16] sm:$0xff] }
0x2024   :  { %v4173_v29 = vadd.f32 0.2548296, %v4171_v33  ;;  %v4427_v33 = vld [vmem:[%s6202_s16 + $0x8] sm:$0xff] }
0x2025   :  { %v4172_v31 = vadd.f32 0.2548296, %v4170_v28 }
0x2026   :  { %v4175_v32 = vmul.f32 %v5392_v15, %v4173_v29  ;;  %v4735_v29 = vsel %vm4349_vm8, 1.0, %v5431_v36 }
0x2027   :  { %v4174_v40 = vmul.f32 %v5394_v54, %v4172_v31  ;;  %v5265_v31 = vpack.c.bf16 %v4427_v33, %v4426_v35 }
0x2028   :  { %v4185_v45 = vmul.f32 %v5396_v38, %v4175_v32  ;;  %v4428_v32 = vld [vmem:[%s6202_s16 + $0x10] sm:$0xff]  ;;  %v4429_v38 = vld [vmem:[%s6202_s16 + $0x18] sm:$0xff] }
0x2029   :  { %v4184_v46 = vmul.f32 %v5398_v43, %v4174_v40  ;;  %v5268_v40 = vpack.c.bf16 %v4429_v38, %v4428_v32 }
0x202a   :  { %v4187_v48 = vsub.f32 1.0, %v4185_v45 }
0x202b   :  { %v4186_v49 = vsub.f32 1.0, %v4184_v46  ;;  %v4511_v46 = vld [vmem:[%s6204_s18] sm:$0xff] }
0x202c   :  { %v4191_v50 = vsub.f32 0.0, %v4187_v48 }
0x202d   :  { %v4190_v51 = vsub.f32 0.0, %v4186_v49 }
0x202e   :  { %v4193_v52 = vsel %vm4189_vm6, %v4191_v50, %v4187_v48  ;;  %v4512_v48 = vld [vmem:[%s6204_s18 + $0x8] sm:$0xff] }
0x202f   :  { %v4195_v56 = vadd.f32 1.0, %v4193_v52  ;;  %v4192_v59 = vsel %vm4188_vm7, %v4190_v51, %v4186_v49  ;;  %v4513_v49 = vld [vmem:[%s6204_s18 + $0x10] sm:$0xff]  ;;  %v5271_v50 = vpack.c.bf16 %v4512_v48, %v4511_v46  ;;  %v4514_v51 = vld [vmem:[%s6204_s18 + $0x18] sm:$0xff]  ;;  %s5445_s18 = smov [#allocation2]  }
0x2030   :  { %v4194_v47 = vadd.f32 1.0, %v4192_v59  ;;  %v5274_v52 = vpack.c.bf16 %v4514_v51, %v4513_v49  ;;  %s4603_s25 = sshll.u32 %s5445_s18, 4  ;;  %s4604_s25 = int_to_ptr.vmem [resolvable:$true] %s4603_s25 }
0x2031   :  { %v4197_v62 = vmul.f32 %v4195_v56, %v4145_v61  ;;  %v4739_v61 = vld [vmem:[%s6205_s19] ss:$0 sm:$0xff]  ;;  %p5412_p1 = scmp.lt.s32.totalorder %s4604_s25, %s4604_s25 }
0x2032   :  { %v4196_v30 = vmul.f32 %v4194_v47, %v4144_v60 }
0x2034   :  { %5165 = vmatprep.mubr.msk.f32.mxu0 %vm2103_vm5, %v4196_v30 }
0x2035   :  { %5166 = vmatmul.mubr.msk.f32.vlgmr.msra.gmra.mrb[32].mxu0 %vm2103_vm5, %v4197_v62 }
0x2108   :  { %v5167_v0 = vpop.f32.mrb[32].mxu0 }
0x2109   :  { %v4293_v53 = vadd.f32 %v5167_v0, %v4728_v63  ;;  %v4287_v1 = vpop.f32.mrb[33].mxu0 }
0x210a   :  { %v4288_v19 = vadd.f32 %v4728_v63, %v4287_v1 }
0x210b   :  { %v4297_v2 = vadd.f32 %v4293_v53, %v6085_v58 }
0x210c   :  { %v4296_v3 = vadd.f32 %v4288_v19, %v6083_v57  ;;  %v5444_v57 = vmov 0.0|0.0  }
0x210d   :  { %v4305_v39 = vsel %vm70_vm0, %v4297_v2, 0.0  ;;  %5261 = vmatprep.subr.bf16.mxu1 %v5444_v57 }
0x210e   :  { %4306 = vadd.xlane.f32.xlu1 %v4305_v39  ;;  %v4302_v42 = vsel %vm70_vm0, %v4296_v3, 0.0 }
0x210f   :  { %4303 = vadd.xlane.f32.xlu0 %v4302_v42 }
0x219b   :  { %v4307_v4 = vpop.xlane.xlu1 %4306 }
0x219c   :  { %v4309_v5 = vmul.f32 0.03125, %v4307_v4  ;;  %v4304_v6 = vpop.xlane.xlu0 %4303 }
0x219d   :  { %v4308_v44 = vmul.f32 0.03125, %v4304_v6 }
0x219e   :  { %v4311_v41 = vsub.f32 %v4297_v2, %v4309_v5 }
0x219f   :  { %v4310_v7 = vsub.f32 %v4296_v3, %v4308_v44 }
0x21a0   :  { %v4313_v8 = vmul.f32 %v4311_v41, %v4311_v41 }
0x21a1   :  { %v4312_v9 = vmul.f32 %v4310_v7, %v4310_v7 }
0x21a2   :  { %v4317_v10 = vsel %vm70_vm0, %v4313_v8, 0.0 }
0x21a3   :  { %4318 = vadd.xlane.f32.xlu1 %v4317_v10  ;;  %v4314_v58 = vsel %vm70_vm0, %v4312_v9, 0.0 }
0x21a4   :  { %4315 = vadd.xlane.f32.xlu0 %v4314_v58 }
0x2230   :  { %v4319_v11 = vpop.xlane.xlu1 %4318 }
0x2231   :  { %v4321_v12 = vmul.f32 0.03125, %v4319_v11  ;;  %v4316_v13 = vpop.xlane.xlu0 %4315 }
0x2232   :  { %v4320_v15 = vmul.f32 0.03125, %v4316_v13 }
0x2233   :  { %v4323_v55 = vadd.f32 1e-12, %v4321_v12 }
0x2234   :  { %v4322_v54 = vadd.f32 1e-12, %v4320_v15 }
0x2235   :  { %5399 = vrsqrt.f32 %v4323_v55 }
0x2236   :  { %5401 = vrsqrt.f32 %v4322_v54 }
0x223f   :  { %v5400_v20 = vpop.eup %5399 }
0x2240   :  { %v5402_v24 = vpop.eup %5401  ;;  %v4327_v25 = vmul.f32 %v5400_v20, %v4311_v41 }
0x2241   :  { %v4326_v26 = vmul.f32 %v5402_v24, %v4310_v7 }
0x2242   :  { %v4335_v27 = vmul.f32 %v4733_v22, %v4327_v25 }
0x2243   :  { %v4334_v34 = vmul.f32 %v4733_v22, %v4326_v26 }
0x2244   :  { %v4343_v14 = vadd.f32 %v4734_v21, %v4335_v27 }
0x2245   :  { %v4342_v16 = vadd.f32 %v4734_v21, %v4334_v34 }
0x2247   :  { %v5262_v28 = vpack.c.bf16 %v4343_v14, %v4342_v16 }
0x2249   :  { %5263 = vmatpush3.bf16.msra.mxu1 %v5262_v28 }
0x224a   :  { %5264 = vmatprep.subr.bf16.mxu1 %v5444_v57 }
0x224c   :  { %5173 = vmatmul.mubr.msk.f32.vlgmr.msra.gmra.mrb[46].mxu1 %vm4352_vm9, %v4735_v29 }
0x224d   :  { %5266 = vmatpush3.bf16.msra.mxu1 %v5265_v31  ;;  %5183 = vmatprep.mubr.msk.f32.mxu1 %vm5432_vm1, %v5431_v36 }
0x224e   :  { %5267 = vmatprep.subr.bf16.mxu1 %v5444_v57 }
0x2251   :  { %5269 = vmatpush3.bf16.msra.mxu1 %v5268_v40 }
0x2252   :  { %5270 = vmatprep.subr.bf16.mxu1 %v5444_v57 }
0x231f   :  { %v4422_v43 = vpop.f32.mrb[46].mxu1 }
0x2320   :  { %v5174_v45 = vpop.f32.mrb[47].mxu1  ;;  %5184 = vmatmul.mubr.msk.f32.vlgmr.msra.gmra.mrb[48].mxu1 %vm70_vm0, %v4422_v43 }
0x2321   :  { %5194 = vmatprep.mubr.msk.f32.mxu1 %vm5432_vm1, %v5431_v36  ;;  %5272 = vmatpush3.bf16.msra.mxu1 %v5271_v50  ;;  %v4737_v36 = vld [vmem:[%s6203_s17] ss:$0 sm:$0xff]  ;;  %s5407_s17 = scalar_lea.vmem %s4604_s25, 32 }
0x2322   :  { %5273 = vmatprep.subr.bf16.mxu1 %v5444_v57  ;;  %p5408_p0 = scmp.ne.s32.totalorder %s4604_s25, %s5407_s17  ;;  %p5413_p2 = scmp.lt.s32.totalorder %s5407_s17, %s5407_s17 }
0x2324   :  { %p5414_p3 = por %p5413_p2, %p5412_p1 }
0x2325   :  { %5275 = vmatpush3.bf16.msra.mxu1 %v5274_v52 }
0x2326   :  { %p5415_p4 = pnand %p5414_p3, %p5408_p0 }
0x23f3   :  { %v4506_v56 = vpop.f32.mrb[48].mxu1 }
0x23f4   :  { %v4507_v59 = vadd.f32 %v4737_v36, %v4506_v56  ;;  %v5185_v60 = vpop.f32.mrb[49].mxu1 }
0x23f6   :  { %5403 = vtanh.f32 %v4507_v59 }
0x2400   :  { %v5404_v47 = vpop.eup %5403 }
0x2401   :  { %5195 = vmatmul.mubr.msk.f32.vlgmr.msra.gmra.mrb[50].mxu1 %vm70_vm0, %v5404_v47 }
0x24d4   :  { %v4591_v30 = vpop.f32.mrb[50].mxu1 }
0x24d5   :  { %v4592_v62 = vadd.f32 %v4739_v61, %v4591_v30  ;;  %v5196_v63 = vpop.f32.mrb[51].mxu1 }
0x24d7   :  { %4596 = vst.msk [vmem:[#allocation2] sm:$0x3] %vm4595_vm10, %v4592_v62 }
0x24d8   :  { %5418 = shalt.err (!%p5415_p4)
}
0x24d9   :  { %s5419_s13 = scalar_lea.hbm %s6206_s20, 32 }
0x24da   :  { %p5420_p5 = scmp.ne.s32.totalorder %s6206_s20, %s5419_s13  ;;  %p5423_p6 = scmp.lt.u32.totalorder %s5419_s13, %s6206_s20 }
0x24dc   :  { %p5425_p7 = pnand %p5423_p6, %p5420_p5 }
0x24de   :  { %5428 = shalt.err (!%p5425_p7)
}
0x24df   :  { %4606 = dma.vmem_to_hbm [thread:$0]  %s4604_s25, 32, %s6206_s20, [#allocation3]  }
0x24e0   :  { %5429 = dma.done.wait [#allocation3], 32  }
0x24e1   :  { %5430 = vsyncadd [#allocation3], 4294967264 }
0x24e2   :  { %4610 = vsyncpa [#allocation3], 1 }

</bundles_post_ra>
